<compile_context>
chip_gen: v7x
topology: tpu7x:2x2x1
jax: 0.10.0
libtpu: 0.0.40
codegen_flags: <defaults>
</compile_context>

<pallas_src>
import jax
import jax.numpy as jnp
from jax.experimental import pallas as pl
from jax.experimental.pallas import tpu as pltpu


def _round_up(x, m):
    return ((x + m - 1) // m) * m


def _largest_tile(total, cap):
    """Largest multiple of 8 that divides `total` (itself a multiple of 8), <= cap."""
    cap = max(8, min(cap, total))
    tb = cap - (cap % 8)
    while tb > 8 and total % tb != 0:
        tb -= 8
    return max(tb, 8)


# --------------------------------------------------------------------------- #
# Kernel
# --------------------------------------------------------------------------- #
def mlp_kernel(x_ref, w1_ref, w2_ref, w3_ref, vec_ref, o_ref):
    H = w1_ref.shape[1]     # num_hidden
    H2 = w2_ref.shape[1]    # num_hidden // 2
    O = w3_ref.shape[1]     # num_output

    vecs = vec_ref[...]                 # (5, width) f32, packed small vectors
    b1 = vecs[0:1, :H]
    gamma = vecs[1:2, :H]
    beta = vecs[2:3, :H]
    b2 = vecs[3:4, :H2]
    b3 = vecs[4:5, :O]

    # fc_input: x tile arrives bf16; MXU matmul with f32 accumulation,
    # bias add in f32 on the VPU.
    h = jnp.dot(x_ref[...], w1_ref[...], preferred_element_type=jnp.float32) + b1

    # LayerNorm over the hidden dim (eps = 1e-5, PyTorch default).
    # Two-pass variance (subtract mean first): the extra XLU reduction is free
    # here and avoids E[h^2]-E[h]^2 cancellation.
    mean = jnp.mean(h, axis=-1, keepdims=True)
    centered = h - mean
    var = jnp.mean(centered * centered, axis=-1, keepdims=True)
    h = centered * jax.lax.rsqrt(var + 1e-5)
    h = h * gamma + beta

    # Dropout: eval / inference mode -> identity.

    # predict: ReLU -> Linear -> ReLU -> Linear (matmuls bf16-in / f32-acc).
    h = jnp.maximum(h, 0.0)
    h2 = jnp.dot(h.astype(jnp.bfloat16), w2_ref[...],
                 preferred_element_type=jnp.float32) + b2
    h2 = jnp.maximum(h2, 0.0)
    out = jnp.dot(h2.astype(jnp.bfloat16), w3_ref[...],
                  preferred_element_type=jnp.float32) + b3

    o_ref[...] = out.astype(o_ref.dtype)


# --------------------------------------------------------------------------- #
# One-time parameter preparation (NOT in the forward hot path)
# --------------------------------------------------------------------------- #
def prepare_params(params):
    """Pack small vectors into one slab and cast weights to bf16, once."""
    (w1, b1, gamma, beta, w2, b2, w3, b3) = params
    H = w1.shape[1]
    H2 = w2.shape[1]
    O = w3.shape[1]

    width = max(H, H2, O)
    vecs = jnp.zeros((5, width), jnp.float32)
    vecs = vecs.at[0, :H].set(b1.reshape(-1).astype(jnp.float32))
    vecs = vecs.at[1, :H].set(gamma.reshape(-1).astype(jnp.float32))
    vecs = vecs.at[2, :H].set(beta.reshape(-1).astype(jnp.float32))
    vecs = vecs.at[3, :H2].set(b2.reshape(-1).astype(jnp.float32))
    vecs = vecs.at[4, :O].set(b3.reshape(-1).astype(jnp.float32))

    w1b = w1.astype(jnp.bfloat16)
    w2b = w2.astype(jnp.bfloat16)
    w3b = w3.astype(jnp.bfloat16)

    prepared = (w1b, w2b, w3b, vecs)
    return jax.block_until_ready(jax.device_put(prepared))


# --------------------------------------------------------------------------- #
# Forward wrapper
# --------------------------------------------------------------------------- #
def mlp_forward(x, prepared, *, block_b=None, out_dtype=jnp.float32):
    w1b, w2b, w3b, vecs = prepared
    B, num_input = x.shape
    O = w3b.shape[1]

    # x is the only per-grid-step DMA traffic: ship it as bf16 (it enters the
    # MXU as bf16 anyway).
    if x.dtype != jnp.bfloat16:
        x = x.astype(jnp.bfloat16)

    # ---- tile selection -------------------------------------------------- #
    # Single-TC chips (v5e/v6e): biggest tile -> grid of 1 step.
    # v7x (2 TCs/chip): cap tile at B/2 so the grid has >= 2 parallel steps.
    try:
        kind = jax.devices()[0].device_kind.lower()
    except Exception:  # pragma: no cover
        kind = ""
    two_tc = "v7" in kind

    padded_B = _round_up(B, 8)
    cap = block_b if block_b is not None else 1024
    if two_tc and padded_B >= 16:
        cap = min(cap, padded_B // 2)
    tb = _largest_tile(padded_B, cap)
    padded_B = _round_up(padded_B, tb)   # only differs from B if padding needed

    if padded_B != B:
        # Padded rows produce garbage-but-finite values (LN of a constant row);
        # they are sliced off below.
        x = jnp.pad(x, ((0, padded_B - B), (0, 0)))

    grid = (padded_B // tb,)
    resident = lambda shape: pl.BlockSpec(shape, lambda i: (0, 0))

    out = pl.pallas_call(
        mlp_kernel,
        out_shape=jax.ShapeDtypeStruct((padded_B, O), out_dtype),
        grid_spec=pltpu.PrefetchScalarGridSpec(
            num_scalar_prefetch=0,
            grid=grid,
            in_specs=[
                pl.BlockSpec((tb, num_input), lambda i: (i, 0)),   # x: tiled on B
                resident(w1b.shape),                               # weights resident
                resident(w2b.shape),
                resident(w3b.shape),
                resident(vecs.shape),                              # packed vectors
            ],
            out_specs=pl.BlockSpec((tb, O), lambda i: (i, 0)),
        ),
        compiler_params=pltpu.CompilerParams(
            dimension_semantics=("parallel",),   # shard batch across TCs on v7x
        ),
    )(x, w1b, w2b, w3b, vecs)

    return out if padded_B == B else out[:B]


# --------------------------------------------------------------------------- #
# Init + pure-JAX reference
# --------------------------------------------------------------------------- #
def init_params(key, num_input, num_hidden, num_output):
    """Deterministic init mimicking PyTorch nn.Linear default (uniform +-1/sqrt(fan_in))."""
    def linear(key, fan_in, fan_out):
        kw, kb = jax.random.split(key)
        bound = 1.0 / jnp.sqrt(fan_in)
        w = jax.random.uniform(kw, (fan_in, fan_out), jnp.float32, -bound, bound)
        b = jax.random.uniform(kb, (1, fan_out), jnp.float32, -bound, bound)
        return w, b

    k1, k2, k3 = jax.random.split(key, 3)
    w1, b1 = linear(k1, num_input, num_hidden)
    gamma = jnp.ones((1, num_hidden), jnp.float32)   # LayerNorm weight
    beta = jnp.zeros((1, num_hidden), jnp.float32)   # LayerNorm bias
    w2, b2 = linear(k2, num_hidden, num_hidden // 2)
    w3, b3 = linear(k3, num_hidden // 2, num_output)
    return (w1, b1, gamma, beta, w2, b2, w3, b3)


def mlp_reference(x, params, matmul_dtype=jnp.bfloat16):
    """Pure-JAX reference with the same matmul precision policy as the kernel."""
    (w1, b1, gamma, beta, w2, b2, w3, b3) = params

    def mm(a, b):
        return jnp.dot(a.astype(matmul_dtype), b.astype(matmul_dtype),
                       preferred_element_type=jnp.float32)

    h = mm(x, w1) + b1
    mean = jnp.mean(h, axis=-1, keepdims=True)
    var = jnp.mean((h - mean) ** 2, axis=-1, keepdims=True)
    h = (h - mean) * jax.lax.rsqrt(var + 1e-5) * gamma + beta
    h = jnp.maximum(h, 0.0)
    h2 = jnp.maximum(mm(h, w2) + b2, 0.0)
    return mm(h2, w3) + b3


if __name__ == "__main__":
    # cfg: num_features=32, hidden=64, label_num=8; dropout irrelevant in eval.
    B, num_input, num_hidden, num_output = 256, 32, 64, 8

    key = jax.random.PRNGKey(0)
    kx, kp = jax.random.split(key)
    x = jax.random.normal(kx, (B, num_input), jnp.float32)
    params = init_params(kp, num_input, num_hidden, num_output)

    prepared = prepare_params(params)            # one-time, outside hot path

    out = mlp_forward(x, prepared)
    out = jax.block_until_ready(out)

    ref = mlp_reference(x, params)                       # same bf16-matmul policy
    ref_f32 = mlp_reference(x, params, jnp.float32)      # full f32 sanity reference

    assert out.shape == (B, num_output)
    assert jnp.allclose(out, ref, atol=2e-3, rtol=2e-3)
    assert jnp.allclose(out, ref_f32, atol=1e-1, rtol=1e-1)

    print("KERNEL_OK")
</pallas_src>

<mosaic_0001>
module attributes {stable_mosaic.version = 11 : i64} {
  func.func @mlp_kernel(%arg0: i32, %arg1: memref<256x32xbf16, #tpu.memory_space<vmem>>, %arg2: memref<32x64xbf16, #tpu.memory_space<vmem>>, %arg3: memref<64x32xbf16, #tpu.memory_space<vmem>>, %arg4: memref<32x8xbf16, #tpu.memory_space<vmem>>, %arg5: memref<5x64xf32, #tpu.memory_space<vmem>>, %arg6: memref<256x8xf32, #tpu.memory_space<vmem>>) attributes {dimension_semantics = [#tpu.dimension_semantics<parallel>], iteration_bounds = array<i64: 1>, scalar_prefetch = 0 : i64, scratch_operands = 0 : i64, tpu.core_type = #tpu.core_type<tc>, window_params = [{transform_indices = @transform_0, window_bounds = array<i64: 256, 32>}, {pipeline_mode = #tpu.pipeline_mode<synchronous>, transform_indices = @transform_1, window_bounds = array<i64: 32, 64>}, {pipeline_mode = #tpu.pipeline_mode<synchronous>, transform_indices = @transform_2, window_bounds = array<i64: 64, 32>}, {pipeline_mode = #tpu.pipeline_mode<synchronous>, transform_indices = @transform_3, window_bounds = array<i64: 32, 8>}, {pipeline_mode = #tpu.pipeline_mode<synchronous>, transform_indices = @transform_4, window_bounds = array<i64: 5, 64>}, {transform_indices = @transform_5, window_bounds = array<i64: 256, 8>}]} {
    %c0 = arith.constant 0 : index
    %c0_0 = arith.constant 0 : index
    %0 = vector.load %arg5[%c0, %c0_0] : memref<5x64xf32, #tpu.memory_space<vmem>>, vector<5x64xf32>
    %1 = vector.extract_strided_slice %0 {offsets = [0, 0], sizes = [1, 64], strides = [1, 1]} : vector<5x64xf32> to vector<1x64xf32>
    %2 = vector.extract_strided_slice %0 {offsets = [1, 0], sizes = [1, 64], strides = [1, 1]} : vector<5x64xf32> to vector<1x64xf32>
    %3 = vector.extract_strided_slice %0 {offsets = [2, 0], sizes = [1, 64], strides = [1, 1]} : vector<5x64xf32> to vector<1x64xf32>
    %4 = vector.extract_strided_slice %0 {offsets = [3, 0], sizes = [1, 32], strides = [1, 1]} : vector<5x64xf32> to vector<1x32xf32>
    %5 = vector.extract_strided_slice %0 {offsets = [4, 0], sizes = [1, 8], strides = [1, 1]} : vector<5x64xf32> to vector<1x8xf32>
    %c0_1 = arith.constant 0 : index
    %c0_2 = arith.constant 0 : index
    %6 = vector.load %arg1[%c0_1, %c0_2] : memref<256x32xbf16, #tpu.memory_space<vmem>>, vector<256x32xbf16>
    %c0_3 = arith.constant 0 : index
    %c0_4 = arith.constant 0 : index
    %7 = vector.load %arg2[%c0_3, %c0_4] : memref<32x64xbf16, #tpu.memory_space<vmem>>, vector<32x64xbf16>
    %cst = arith.constant dense<0.000000e+00> : vector<256x64xf32>
    %8 = tpu.matmul %6, %7, %cst {dimension_numbers = #tpu.dot_dimension_numbers<[1], [0], [0], [1], [0, 0, 1, 1], [], []>} : vector<256x32xbf16>, vector<32x64xbf16>, vector<256x64xf32> -> vector<256x64xf32>
    %9 = vector.broadcast %1 : vector<1x64xf32> to vector<256x64xf32>
    %10 = arith.addf %8, %9 : vector<256x64xf32>
    %cst_5 = arith.constant dense<0.000000e+00> : vector<256xf32>
    %11 = vector.multi_reduction <add>, %10, %cst_5 [1] : vector<256x64xf32> to vector<256xf32>
    %12 = vector.shape_cast %11 : vector<256xf32> to vector<256x1xf32>
    %cst_6 = arith.constant 6.400000e+01 : f32
    %13 = vector.broadcast %cst_6 : f32 to vector<256x1xf32>
    %14 = arith.divf %12, %13 : vector<256x1xf32>
    %15 = vector.broadcast %14 : vector<256x1xf32> to vector<256x64xf32>
    %16 = arith.subf %10, %15 : vector<256x64xf32>
    %17 = arith.mulf %16, %16 : vector<256x64xf32>
    %cst_7 = arith.constant dense<0.000000e+00> : vector<256xf32>
    %18 = vector.multi_reduction <add>, %17, %cst_7 [1] : vector<256x64xf32> to vector<256xf32>
    %19 = vector.shape_cast %18 : vector<256xf32> to vector<256x1xf32>
    %cst_8 = arith.constant 6.400000e+01 : f32
    %20 = vector.broadcast %cst_8 : f32 to vector<256x1xf32>
    %21 = arith.divf %19, %20 : vector<256x1xf32>
    %cst_9 = arith.constant 9.99999974E-6 : f32
    %22 = vector.broadcast %cst_9 : f32 to vector<256x1xf32>
    %23 = arith.addf %21, %22 : vector<256x1xf32>
    %24 = math.rsqrt %23 : vector<256x1xf32>
    %25 = vector.broadcast %24 : vector<256x1xf32> to vector<256x64xf32>
    %26 = arith.mulf %16, %25 : vector<256x64xf32>
    %27 = vector.broadcast %2 : vector<1x64xf32> to vector<256x64xf32>
    %28 = arith.mulf %26, %27 : vector<256x64xf32>
    %29 = vector.broadcast %3 : vector<1x64xf32> to vector<256x64xf32>
    %30 = arith.addf %28, %29 : vector<256x64xf32>
    %cst_10 = arith.constant 0.000000e+00 : f32
    %31 = vector.broadcast %cst_10 : f32 to vector<256x64xf32>
    %32 = arith.maximumf %30, %31 : vector<256x64xf32>
    %33 = arith.truncf %32 : vector<256x64xf32> to vector<256x64xbf16>
    %c0_11 = arith.constant 0 : index
    %c0_12 = arith.constant 0 : index
    %34 = vector.load %arg3[%c0_11, %c0_12] : memref<64x32xbf16, #tpu.memory_space<vmem>>, vector<64x32xbf16>
    %cst_13 = arith.constant dense<0.000000e+00> : vector<256x32xf32>
    %35 = tpu.matmul %33, %34, %cst_13 {dimension_numbers = #tpu.dot_dimension_numbers<[1], [0], [0], [1], [0, 0, 1, 1], [], []>} : vector<256x64xbf16>, vector<64x32xbf16>, vector<256x32xf32> -> vector<256x32xf32>
    %36 = vector.broadcast %4 : vector<1x32xf32> to vector<256x32xf32>
    %37 = arith.addf %35, %36 : vector<256x32xf32>
    %cst_14 = arith.constant 0.000000e+00 : f32
    %38 = vector.broadcast %cst_14 : f32 to vector<256x32xf32>
    %39 = arith.maximumf %37, %38 : vector<256x32xf32>
    %40 = arith.truncf %39 : vector<256x32xf32> to vector<256x32xbf16>
    %c0_15 = arith.constant 0 : index
    %c0_16 = arith.constant 0 : index
    %41 = vector.load %arg4[%c0_15, %c0_16] : memref<32x8xbf16, #tpu.memory_space<vmem>>, vector<32x8xbf16>
    %cst_17 = arith.constant dense<0.000000e+00> : vector<256x8xf32>
    %42 = tpu.matmul %40, %41, %cst_17 {dimension_numbers = #tpu.dot_dimension_numbers<[1], [0], [0], [1], [0, 0, 1, 1], [], []>} : vector<256x32xbf16>, vector<32x8xbf16>, vector<256x8xf32> -> vector<256x8xf32>
    %43 = vector.broadcast %5 : vector<1x8xf32> to vector<256x8xf32>
    %44 = arith.addf %42, %43 : vector<256x8xf32>
    %c0_18 = arith.constant 0 : index
    %c0_19 = arith.constant 0 : index
    %45 = vector.load %arg6[%c0_18, %c0_19] : memref<256x8xf32, #tpu.memory_space<vmem>>, vector<256x8xf32>
    tpu.vector_store %arg6[%c0_18, %c0_19], %44 {strides = array<i32>} : memref<256x8xf32, #tpu.memory_space<vmem>>, vector<256x8xf32>,
    return
  }
  func.func @transform_0(%arg0: i32) -> (i32, i32) {
    %c0_i32 = arith.constant 0 : i32
    %c0_i32_0 = arith.constant 0 : i32
    return %arg0, %c0_i32 : i32, i32
  }
  func.func @transform_1(%arg0: i32) -> (i32, i32) {
    %c0_i32 = arith.constant 0 : i32
    %c0_i32_0 = arith.constant 0 : i32
    %c0_i32_1 = arith.constant 0 : i32
    return %c0_i32, %c0_i32_0 : i32, i32
  }
  func.func @transform_2(%arg0: i32) -> (i32, i32) {
    %c0_i32 = arith.constant 0 : i32
    %c0_i32_0 = arith.constant 0 : i32
    %c0_i32_1 = arith.constant 0 : i32
    return %c0_i32, %c0_i32_0 : i32, i32
  }
  func.func @transform_3(%arg0: i32) -> (i32, i32) {
    %c0_i32 = arith.constant 0 : i32
    %c0_i32_0 = arith.constant 0 : i32
    %c0_i32_1 = arith.constant 0 : i32
    return %c0_i32, %c0_i32_0 : i32, i32
  }
  func.func @transform_4(%arg0: i32) -> (i32, i32) {
    %c0_i32 = arith.constant 0 : i32
    %c0_i32_0 = arith.constant 0 : i32
    %c0_i32_1 = arith.constant 0 : i32
    return %c0_i32, %c0_i32_0 : i32, i32
  }
  func.func @transform_5(%arg0: i32) -> (i32, i32) {
    %c0_i32 = arith.constant 0 : i32
    %c0_i32_0 = arith.constant 0 : i32
    return %arg0, %c0_i32 : i32, i32
  }
}

</mosaic_0001>

<bundles_post_ra>
// kernel: tpu_custom_call.1
= control target key start
LH: loop header
LB: loop body
LE: loop exit
PB: predicated region body
PF: predicated region fallthrough
CT: control target
= control target key end

     0   :  { %vm154_vm0 = vcmask 261120   ;;  %v58_v18 = vlaneseq  ;;  %vm364_vm1 = vcmask 523264   ;;  %vm1424_vm2 = vcmask 64512   ;;  %s2634_s1 = inlined_call_operand.vmem [shape: bf16[32,64], index: 1, kind: input, shape index: {}]   ;;  %s2635_s0 = inlined_call_operand.vmem [shape: bf16[256,32], index: 0, kind: input, shape index: {}]   ;;  %s2636_s4 = inlined_call_operand.vmem [shape: f32[5,64], index: 4, kind: input, shape index: {}]   ;;  %s2637_s2 = inlined_call_operand.vmem [shape: bf16[64,32], index: 2, kind: input, shape index: {}]   ;;  %s2638_s3 = inlined_call_operand.vmem [shape: bf16[32,8], index: 3, kind: input, shape index: {}]   ;;  %s2639_s5 = inlined_call_operand.vmem [shape: f32[256,8], index: 5, kind: output, shape index: {}]  }
   0x1   :  { %v1705_v0 = vld [vmem:[%s2634_s1] sm:$0xff]   ;;  %v1706_v1 = vld [vmem:[%s2634_s1 + $0x8] sm:$0xff]   ;;  %v1709_v4 = vld [vmem:[%s2635_s0 + $0x10] sm:$0xff]  }
   0x2   :  { %1589 = vmatprep.subr.bf16.mxu0 %v1705_v0  ;;  %v1707_v2 = vld [vmem:[%s2635_s0] sm:$0xff]   ;;  %1701 = vmatprep.subr.bf16.mxu1 %v1705_v0  ;;  %v1708_v3 = vld [vmem:[%s2635_s0 + $0x8] sm:$0xff]   ;;  %v1717_v7 = vld [vmem:[%s2635_s0 + $0x50] sm:$0xff]   ;;  %v1894_v19 = vshrl.u32 %v58_v18, 7 }
   0x3   :  { %1590 = vmatpush3.bf16.msra.mxu0 %v1705_v0  ;;  %1703 = vmatpush3.bf16.msra.mxu1 %v1705_v0  ;;  %v1715_v5 = vld [vmem:[%s2635_s0 + $0x40] sm:$0xff]   ;;  %v1716_v6 = vld [vmem:[%s2635_s0 + $0x48] sm:$0xff]   ;;  %v1710_v8 = vld [vmem:[%s2635_s0 + $0x18] sm:$0xff]  }
   0x4   :  { %1591 = vmatprep.subr.bf16.mxu0 %v1706_v1  ;;  %1593 = vmatprep.mubr.msk.bf16.mxu0 %vm154_vm0, %v1707_v2  ;;  %v1711_v9 = vld [vmem:[%s2635_s0 + $0x20] sm:$0xff]   ;;  %v1718_v10 = vld [vmem:[%s2635_s0 + $0x58] sm:$0xff]   ;;  %v1712_v12 = vld [vmem:[%s2635_s0 + $0x28] sm:$0xff]   ;;  %v60_v20 = vsub.s32 0, %v1894_v19 }
   0x5   :  { %1702 = vmatprep.subr.bf16.mxu1 %v1706_v1  ;;  %1609 = vmatprep.mubr.msk.bf16.mxu1 %vm154_vm0, %v1715_v5  ;;  %v1719_v11 = vld [vmem:[%s2635_s0 + $0x60] sm:$0xff]   ;;  %v1713_v13 = vld [vmem:[%s2635_s0 + $0x30] sm:$0xff]   ;;  %v1720_v14 = vld [vmem:[%s2635_s0 + $0x68] sm:$0xff]  }
   0x6   :  { %v1721_v15 = vld [vmem:[%s2635_s0 + $0x70] sm:$0xff]   ;;  %v1714_v16 = vld [vmem:[%s2635_s0 + $0x38] sm:$0xff]   ;;  %v1900_v21 = vld [vmem:[%s2636_s4] sm:$0x1f] }
   0x7   :  { %1592 = vmatpush3.bf16.msra.mxu0 %v1706_v1  ;;  %1704 = vmatpush3.bf16.msra.mxu1 %v1706_v1  ;;  %v1722_v17 = vld [vmem:[%s2635_s0 + $0x78] sm:$0xff]   ;;  %v1903_v22 = vrot.slane %v1900_v21, %v60_v20 }
   0xa   :  { %1594 = vmatmul.mubr.msk.bf16.vlgmr.msra.gmra.mrb[0].mxu0 %vm154_vm0, %v1708_v3  ;;  %1610 = vmatmul.mubr.msk.bf16.vlgmr.msra.gmra.mrb[0].mxu1 %vm154_vm0, %v1716_v6 }
   0xb   :  { %1597 = vmatprep.mubr.msk.bf16.mxu0 %vm154_vm0, %v1709_v4  ;;  %1613 = vmatprep.mubr.msk.bf16.mxu1 %vm154_vm0, %v1717_v7 }
  0x12   :  { %1598 = vmatmul.mubr.msk.bf16.gmra.mrb[4].mxu0 %vm154_vm0, %v1710_v8  ;;  %1614 = vmatmul.mubr.msk.bf16.gmra.mrb[4].mxu1 %vm154_vm0, %v1718_v10 }
  0x13   :  { %1601 = vmatprep.mubr.msk.bf16.mxu0 %vm154_vm0, %v1711_v9  ;;  %1617 = vmatprep.mubr.msk.bf16.mxu1 %vm154_vm0, %v1719_v11 }
  0x1a   :  { %1602 = vmatmul.mubr.msk.bf16.gmra.mrb[8].mxu0 %vm154_vm0, %v1712_v12  ;;  %1618 = vmatmul.mubr.msk.bf16.gmra.mrb[8].mxu1 %vm154_vm0, %v1720_v14 }
  0x1b   :  { %1605 = vmatprep.mubr.msk.bf16.mxu0 %vm154_vm0, %v1713_v13  ;;  %1621 = vmatprep.mubr.msk.bf16.mxu1 %vm154_vm0, %v1721_v15 }
  0x22   :  { %1606 = vmatmul.mubr.msk.bf16.gmra.mrb[12].mxu0 %vm154_vm0, %v1714_v16  ;;  %1622 = vmatmul.mubr.msk.bf16.gmra.mrb[12].mxu1 %vm154_vm0, %v1722_v17 }
  0xdd   :  { %v1595_v23 = vpop.f32.mrb[0].mxu0  ;;  %v1916_v31 = vpop.f32.mrb[0].mxu1 }
  0xde   :  { %v1906_v24 = vadd.f32 %v1595_v23, %v1903_v22  ;;  %v237_v25 = vpop.f32.mrb[1].mxu0  ;;  %v301_v34 = vpop.f32.mrb[1].mxu1 }
  0xdf   :  { %v1909_v26 = vadd.f32 %v237_v25, %v1903_v22  ;;  %v1596_v27 = vpop.f32.mrb[2].mxu0  ;;  %v1923_v35 = vpop.f32.mrb[2].mxu1  ;;  %v1994_v23 = vadd.f32 %v301_v34, %v1903_v22 }
  0xe0   :  { %v1912_v28 = vadd.f32 %v1596_v27, %v1903_v22  ;;  %v240_v29 = vpop.f32.mrb[3].mxu0  ;;  %v371_v30 = vsel %vm364_vm1, %v1906_v24, 0.0  ;;  %v1925_v36 = vpop.f32.mrb[3].mxu1 }
  0xe1   :  { %v1919_v32 = vadd.f32 %v240_v29, %v1903_v22  ;;  %372 = vadd.xlane.f32.xlu1 %v371_v30  ;;  %v365_v33 = vsel %vm364_vm1, %v1909_v26, 0.0  ;;  %v2003_v30 = vadd.f32 %v1925_v36, %v1903_v22  ;;  %v413_v34 = vsel %vm364_vm1, %v1994_v23, 0.0 }
  0xe2   :  { %366 = vadd.xlane.f32.xlu0 %v365_v33  ;;  %v374_v37 = vsel %vm364_vm1, %v1912_v28, 0.0  ;;  %v2017_v36 = vadd.f32 %v1923_v35, %v1903_v22 }
  0xe3   :  { %v368_v39 = vsel %vm364_vm1, %v1919_v32, 0.0 }
  0xe5   :  { %375 = vadd.xlane.f32.xlu1 %v374_v37  ;;  %v1599_v38 = vpop.f32.mrb[4].mxu0  ;;  %v1934_v44 = vpop.f32.mrb[4].mxu1  ;;  %v2011_v37 = vadd.f32 %v1916_v31, %v1903_v22  ;;  %v422_v31 = vsel %vm364_vm1, %v2017_v36, 0.0 }
  0xe6   :  { %v253_v40 = vpop.f32.mrb[5].mxu0  ;;  %369 = vadd.xlane.f32.xlu0 %v368_v39  ;;  %v1937_v45 = vadd.f32 %v1599_v38, %v1903_v22  ;;  %v317_v48 = vpop.f32.mrb[5].mxu1  ;;  %v416_v38 = vsel %vm364_vm1, %v2003_v30, 0.0  ;;  %v2033_v35 = vadd.f32 %v1934_v44, %v1903_v22 }
  0xe7   :  { %v1932_v41 = vadd.f32 %v253_v40, %v1903_v22  ;;  %v1600_v42 = vpop.f32.mrb[6].mxu0  ;;  %v1944_v49 = vpop.f32.mrb[6].mxu1  ;;  %v2020_v39 = vadd.f32 %v317_v48, %v1903_v22  ;;  %v419_v40 = vsel %vm364_vm1, %v2011_v37, 0.0 }
  0xe8   :  { %v256_v43 = vpop.f32.mrb[7].mxu0  ;;  %v1947_v50 = vadd.f32 %v1600_v42, %v1903_v22  ;;  %v320_v52 = vpop.f32.mrb[7].mxu1  ;;  %v383_v54 = vsel %vm364_vm1, %v1937_v45, 0.0  ;;  %v2039_v48 = vadd.f32 %v1944_v49, %v1903_v22 }
  0xe9   :  { %v1940_v46 = vadd.f32 %v256_v43, %v1903_v22  ;;  %v377_v47 = vsel %vm364_vm1, %v1932_v41, 0.0  ;;  %v2025_v42 = vadd.f32 %v320_v52, %v1903_v22  ;;  %v425_v43 = vsel %vm364_vm1, %v2020_v39, 0.0 }
  0xea   :  { %378 = vadd.xlane.f32.xlu0 %v377_v47  ;;  %v386_v58 = vsel %vm364_vm1, %v1947_v50, 0.0  ;;  %v431_v52 = vsel %vm364_vm1, %v2033_v35, 0.0  ;;  %v434_v44 = vsel %vm364_vm1, %v2039_v48, 0.0 }
  0xeb   :  { %v380_v51 = vsel %vm364_vm1, %v1940_v46, 0.0  ;;  %v428_v47 = vsel %vm364_vm1, %v2025_v42, 0.0 }
  0xec   :  { %381 = vadd.xlane.f32.xlu1 %v380_v51 }
  0xed   :  { %v1603_v53 = vpop.f32.mrb[8].mxu0  ;;  %v1958_v60 = vpop.f32.mrb[8].mxu1 }
  0xee   :  { %v269_v55 = vpop.f32.mrb[9].mxu0  ;;  %384 = vadd.xlane.f32.xlu0 %v383_v54  ;;  %v1961_v61 = vadd.f32 %v1603_v53, %v1903_v22  ;;  %v333_v0 = vpop.f32.mrb[9].mxu1  ;;  %v2055_v49 = vadd.f32 %v1958_v60, %v1903_v22 }
  0xef   :  { %v1954_v56 = vadd.f32 %v269_v55, %v1903_v22  ;;  %v1604_v57 = vpop.f32.mrb[10].mxu0  ;;  %v1620_v1 = vpop.f32.mrb[10].mxu1  ;;  %v2042_v51 = vadd.f32 %v333_v0, %v1903_v22 }
  0xf0   :  { %v272_v59 = vpop.f32.mrb[11].mxu0  ;;  %387 = vadd.xlane.f32.xlu1 %v386_v58  ;;  %v1969_v2 = vadd.f32 %v1604_v57, %v1903_v22  ;;  %v336_v4 = vpop.f32.mrb[11].mxu1  ;;  %v395_v6 = vsel %vm364_vm1, %v1961_v61, 0.0  ;;  %v2060_v57 = vadd.f32 %v1620_v1, %v1903_v22 }
  0xf1   :  { %v1964_v62 = vadd.f32 %v272_v59, %v1903_v22  ;;  %v389_v63 = vsel %vm364_vm1, %v1954_v56, 0.0  ;;  %v2047_v53 = vadd.f32 %v336_v4, %v1903_v22  ;;  %v437_v54 = vsel %vm364_vm1, %v2042_v51, 0.0 }
  0xf2   :  { %390 = vadd.xlane.f32.xlu0 %v389_v63  ;;  %v398_v10 = vsel %vm364_vm1, %v1969_v2, 0.0  ;;  %v443_v59 = vsel %vm364_vm1, %v2055_v49, 0.0  ;;  %v446_v60 = vsel %vm364_vm1, %v2060_v57, 0.0 }
  0xf3   :  { %v392_v3 = vsel %vm364_vm1, %v1964_v62, 0.0  ;;  %v440_v55 = vsel %vm364_vm1, %v2047_v53, 0.0 }
  0xf4   :  { %393 = vadd.xlane.f32.xlu1 %v392_v3 }
  0xf5   :  { %v1607_v5 = vpop.f32.mrb[12].mxu0  ;;  %v1623_v12 = vpop.f32.mrb[12].mxu1 }
  0xf6   :  { %v285_v7 = vpop.f32.mrb[13].mxu0  ;;  %396 = vadd.xlane.f32.xlu0 %v395_v6  ;;  %v1981_v13 = vadd.f32 %v1607_v5, %v1903_v22  ;;  %v349_v16 = vpop.f32.mrb[13].mxu1  ;;  %v2075_v1 = vadd.f32 %v1623_v12, %v1903_v22 }
  0xf7   :  { %v1976_v8 = vadd.f32 %v285_v7, %v1903_v22  ;;  %v1608_v9 = vpop.f32.mrb[14].mxu0  ;;  %v1624_v17 = vpop.f32.mrb[14].mxu1  ;;  %v2063_v58 = vadd.f32 %v349_v16, %v1903_v22 }
  0xf8   :  { %v288_v11 = vpop.f32.mrb[15].mxu0  ;;  %399 = vadd.xlane.f32.xlu1 %v398_v10  ;;  %v1989_v18 = vadd.f32 %v1608_v9, %v1903_v22  ;;  %v1997_v25 = vadd.f32 %v1624_v17, %v1903_v22  ;;  %v352_v27 = vpop.f32.mrb[15].mxu1  ;;  %v407_v29 = vsel %vm364_vm1, %v1981_v13, 0.0  ;;  %v455_v4 = vsel %vm364_vm1, %v2075_v1, 0.0 }
  0xf9   :  { %v1984_v14 = vadd.f32 %v288_v11, %v1903_v22  ;;  %v401_v15 = vsel %vm364_vm1, %v1976_v8, 0.0  ;;  %v2068_v63 = vadd.f32 %v352_v27, %v1903_v22  ;;  %v449_v0 = vsel %vm364_vm1, %v2063_v58, 0.0 }
  0xfa   :  { %402 = vadd.xlane.f32.xlu0 %v401_v15  ;;  %v410_v33 = vsel %vm364_vm1, %v1989_v18, 0.0  ;;  %v458_v5 = vsel %vm364_vm1, %v1997_v25, 0.0 }
  0xfb   :  { %v404_v20 = vsel %vm364_vm1, %v1984_v14, 0.0  ;;  %v452_v3 = vsel %vm364_vm1, %v2068_v63, 0.0 }
  0xfc   :  { %405 = vadd.xlane.f32.xlu1 %v404_v20 }
  0xfe   :  { %408 = vadd.xlane.f32.xlu0 %v407_v29 }
 0x100   :  { %411 = vadd.xlane.f32.xlu1 %v410_v33 }
 0x102   :  { %414 = vadd.xlane.f32.xlu0 %v413_v34 }
 0x104   :  { %417 = vadd.xlane.f32.xlu1 %v416_v38 }
 0x106   :  { %420 = vadd.xlane.f32.xlu0 %v419_v40 }
 0x108   :  { %423 = vadd.xlane.f32.xlu1 %v422_v31 }
 0x10a   :  { %426 = vadd.xlane.f32.xlu0 %v425_v43 }
 0x10c   :  { %429 = vadd.xlane.f32.xlu1 %v428_v47 }
 0x10e   :  { %432 = vadd.xlane.f32.xlu0 %v431_v52 }
 0x110   :  { %435 = vadd.xlane.f32.xlu1 %v434_v44 }
 0x112   :  { %438 = vadd.xlane.f32.xlu0 %v437_v54 }
 0x114   :  { %441 = vadd.xlane.f32.xlu1 %v440_v55 }
 0x116   :  { %444 = vadd.xlane.f32.xlu0 %v443_v59 }
 0x118   :  { %447 = vadd.xlane.f32.xlu1 %v446_v60 }
 0x11a   :  { %450 = vadd.xlane.f32.xlu0 %v449_v0 }
 0x11c   :  { %453 = vadd.xlane.f32.xlu1 %v452_v3 }
 0x11e   :  { %456 = vadd.xlane.f32.xlu0 %v455_v4 }
 0x120   :  { %459 = vadd.xlane.f32.xlu1 %v458_v5 }
 0x16e   :  { %v373_v6 = vpop.xlane.xlu1 %372 }
 0x16f   :  { %v464_v7 = vmul.f32 0.015625, %v373_v6  ;;  %v367_v9 = vpop.xlane.xlu0 %366 }
 0x170   :  { %v462_v10 = vmul.f32 0.015625, %v367_v9 }
 0x171   :  { %v2084_v22 = vsub.f32 %v1906_v24, %v464_v7 }
 0x172   :  { %v2087_v11 = vsub.f32 %v1909_v26, %v462_v10  ;;  %v376_v12 = vpop.xlane.xlu1 %375 }
 0x173   :  { %v465_v15 = vmul.f32 0.015625, %v376_v12  ;;  %v370_v16 = vpop.xlane.xlu0 %369  ;;  %v528_v24 = vmul.f32 %v2084_v22, %v2084_v22 }
 0x174   :  { %v463_v17 = vmul.f32 0.015625, %v370_v16  ;;  %v526_v20 = vmul.f32 %v2087_v11, %v2087_v11 }
 0x175   :  { %v2092_v27 = vsub.f32 %v1912_v28, %v465_v15  ;;  %v564_v43 = vsel %vm364_vm1, %v528_v24, 0.0 }
 0x176   :  { %v2095_v29 = vsub.f32 %v1919_v32, %v463_v17  ;;  %v558_v33 = vsel %vm364_vm1, %v526_v20, 0.0 }
 0x177   :  { %559 = vadd.xlane.f32.xlu0 %v558_v33  ;;  %v379_v26 = vpop.xlane.xlu0 %378  ;;  %v529_v31 = vmul.f32 %v2092_v27, %v2092_v27 }
 0x178   :  { %v466_v34 = vmul.f32 0.015625, %v379_v26  ;;  %v527_v38 = vmul.f32 %v2095_v29, %v2095_v29 }
 0x179   :  { %v382_v40 = vpop.xlane.xlu1 %381  ;;  %v567_v60 = vsel %vm364_vm1, %v529_v31, 0.0 }
 0x17a   :  { %v2105_v28 = vsub.f32 %v1932_v41, %v466_v34  ;;  %v467_v32 = vmul.f32 0.015625, %v382_v40  ;;  %v561_v47 = vsel %vm364_vm1, %v527_v38, 0.0 }
 0x17b   :  { %565 = vadd.xlane.f32.xlu0 %v564_v43  ;;  %562 = vadd.xlane.f32.xlu1 %v561_v47  ;;  %v385_v52 = vpop.xlane.xlu0 %384 }
 0x17c   :  { %v2110_v44 = vsub.f32 %v1940_v46, %v467_v32  ;;  %v468_v54 = vmul.f32 0.015625, %v385_v52  ;;  %v530_v55 = vmul.f32 %v2105_v28, %v2105_v28 }
 0x17d   :  { %v388_v59 = vpop.xlane.xlu1 %387 }
 0x17e   :  { %v2116_v41 = vsub.f32 %v1937_v45, %v468_v54  ;;  %v469_v0 = vmul.f32 0.015625, %v388_v59  ;;  %v570_v3 = vsel %vm364_vm1, %v530_v55, 0.0  ;;  %v531_v4 = vmul.f32 %v2110_v44, %v2110_v44 }
 0x17f   :  { %568 = vadd.xlane.f32.xlu1 %v567_v60  ;;  %571 = vadd.xlane.f32.xlu0 %v570_v3  ;;  %v391_v46 = vpop.xlane.xlu0 %390 }
 0x180   :  { %v2122_v5 = vsub.f32 %v1947_v50, %v469_v0  ;;  %v470_v6 = vmul.f32 0.015625, %v391_v46  ;;  %v532_v7 = vmul.f32 %v2116_v41, %v2116_v41  ;;  %v573_v45 = vsel %vm364_vm1, %v531_v4, 0.0 }
 0x181   :  { %v394_v9 = vpop.xlane.xlu1 %393 }
 0x182   :  { %v2128_v10 = vsub.f32 %v1954_v56, %v470_v6  ;;  %v471_v12 = vmul.f32 0.015625, %v394_v9  ;;  %v576_v15 = vsel %vm364_vm1, %v532_v7, 0.0  ;;  %v533_v16 = vmul.f32 %v2122_v5, %v2122_v5 }
 0x183   :  { %574 = vadd.xlane.f32.xlu1 %v573_v45  ;;  %577 = vadd.xlane.f32.xlu0 %v576_v15  ;;  %v397_v50 = vpop.xlane.xlu0 %396 }
 0x184   :  { %v2134_v17 = vsub.f32 %v1964_v62, %v471_v12  ;;  %v472_v20 = vmul.f32 0.015625, %v397_v50  ;;  %v534_v33 = vmul.f32 %v2128_v10, %v2128_v10  ;;  %v579_v56 = vsel %vm364_vm1, %v533_v16, 0.0 }
 0x185   :  { %v400_v24 = vpop.xlane.xlu1 %399 }
 0x186   :  { %v2140_v26 = vsub.f32 %v1961_v61, %v472_v20  ;;  %v473_v34 = vmul.f32 0.015625, %v400_v24  ;;  %v582_v38 = vsel %vm364_vm1, %v534_v33, 0.0  ;;  %v535_v40 = vmul.f32 %v2134_v17, %v2134_v17 }
 0x187   :  { %580 = vadd.xlane.f32.xlu1 %v579_v56  ;;  %583 = vadd.xlane.f32.xlu0 %v582_v38  ;;  %v403_v62 = vpop.xlane.xlu0 %402 }
 0x188   :  { %v2146_v31 = vsub.f32 %v1969_v2, %v473_v34  ;;  %v474_v32 = vmul.f32 0.015625, %v403_v62  ;;  %v536_v43 = vmul.f32 %v2140_v26, %v2140_v26  ;;  %v585_v61 = vsel %vm364_vm1, %v535_v40, 0.0  ;;  %v1723_v62 = vld [vmem:[%s2637_s2] sm:$0xff]  }
 0x189   :  { %v406_v47 = vpop.xlane.xlu1 %405  ;;  %1625 = vmatprep.subr.bf16.mxu1 %v1723_v62 }
 0x18a   :  { %v2152_v52 = vsub.f32 %v1976_v8, %v474_v32  ;;  %v475_v54 = vmul.f32 0.015625, %v406_v47  ;;  %v588_v55 = vsel %vm364_vm1, %v536_v43, 0.0  ;;  %v537_v59 = vmul.f32 %v2146_v31, %v2146_v31  ;;  %1626 = vmatpush3.bf16.msra.mxu1 %v1723_v62 }
 0x18b   :  { %586 = vadd.xlane.f32.xlu1 %v585_v61  ;;  %589 = vadd.xlane.f32.xlu0 %v588_v55  ;;  %v409_v2 = vpop.xlane.xlu0 %408 }
 0x18c   :  { %v2158_v60 = vsub.f32 %v1984_v14, %v475_v54  ;;  %v476_v0 = vmul.f32 0.015625, %v409_v2  ;;  %v538_v3 = vmul.f32 %v2152_v52, %v2152_v52  ;;  %v591_v8 = vsel %vm364_vm1, %v537_v59, 0.0 }
 0x18d   :  { %v412_v4 = vpop.xlane.xlu1 %411 }
 0x18e   :  { %v2164_v46 = vsub.f32 %v1981_v13, %v476_v0  ;;  %v477_v6 = vmul.f32 0.015625, %v412_v4  ;;  %v594_v7 = vsel %vm364_vm1, %v538_v3, 0.0  ;;  %v539_v9 = vmul.f32 %v2158_v60, %v2158_v60  ;;  %v1724_v0 = vld [vmem:[%s2637_s2 + $0x8] sm:$0xff]  }
 0x18f   :  { %592 = vadd.xlane.f32.xlu1 %v591_v8  ;;  %595 = vadd.xlane.f32.xlu0 %v594_v7  ;;  %v415_v14 = vpop.xlane.xlu0 %414 }
 0x190   :  { %v2170_v45 = vsub.f32 %v1989_v18, %v477_v6  ;;  %v478_v12 = vmul.f32 0.015625, %v415_v14  ;;  %v540_v15 = vmul.f32 %v2164_v46, %v2164_v46  ;;  %v597_v13 = vsel %vm364_vm1, %v539_v9, 0.0  ;;  %1627 = vmatprep.subr.bf16.mxu1 %v1724_v0 }
 0x191   :  { %v418_v16 = vpop.xlane.xlu1 %417  ;;  %1628 = vmatpush3.bf16.msra.mxu1 %v1724_v0 }
 0x192   :  { %v2176_v50 = vsub.f32 %v1994_v23, %v478_v12  ;;  %v479_v20 = vmul.f32 0.015625, %v418_v16  ;;  %v600_v33 = vsel %vm364_vm1, %v540_v15, 0.0  ;;  %v541_v24 = vmul.f32 %v2170_v45, %v2170_v45  ;;  %v1725_v15 = vld [vmem:[%s2637_s2 + $0x10] sm:$0xff]  }
 0x193   :  { %598 = vadd.xlane.f32.xlu1 %v597_v13  ;;  %601 = vadd.xlane.f32.xlu0 %v600_v33  ;;  %v421_v18 = vpop.xlane.xlu0 %420 }
 0x194   :  { %v2182_v56 = vsub.f32 %v2003_v30, %v479_v20  ;;  %v480_v34 = vmul.f32 0.015625, %v421_v18  ;;  %v542_v38 = vmul.f32 %v2176_v50, %v2176_v50  ;;  %v603_v23 = vsel %vm364_vm1, %v541_v24, 0.0  ;;  %1629 = vmatprep.subr.bf16.mxu1 %v1725_v15 }
 0x195   :  { %v424_v40 = vpop.xlane.xlu1 %423  ;;  %1630 = vmatpush3.bf16.msra.mxu1 %v1725_v15 }
 0x196   :  { %v2191_v32 = vsub.f32 %v2011_v37, %v480_v34  ;;  %v481_v43 = vmul.f32 0.015625, %v424_v40  ;;  %v606_v47 = vsel %vm364_vm1, %v542_v38, 0.0  ;;  %v543_v30 = vmul.f32 %v2182_v56, %v2182_v56  ;;  %v1726_v40 = vld [vmem:[%s2637_s2 + $0x18] sm:$0xff]  }
 0x197   :  { %604 = vadd.xlane.f32.xlu1 %v603_v23  ;;  %607 = vadd.xlane.f32.xlu0 %v606_v47  ;;  %v427_v61 = vpop.xlane.xlu0 %426 }
 0x198   :  { %v2197_v54 = vsub.f32 %v2017_v36, %v481_v43  ;;  %v482_v55 = vmul.f32 0.015625, %v427_v61  ;;  %v544_v59 = vmul.f32 %v2191_v32, %v2191_v32  ;;  %v609_v37 = vsel %vm364_vm1, %v543_v30, 0.0  ;;  %1631 = vmatprep.subr.bf16.mxu1 %v1726_v40 }
 0x199   :  { %v430_v2 = vpop.xlane.xlu1 %429  ;;  %1632 = vmatpush3.bf16.msra.mxu1 %v1726_v40 }
 0x19a   :  { %v2206_v3 = vsub.f32 %v2020_v39, %v482_v55  ;;  %v483_v4 = vmul.f32 0.015625, %v430_v2  ;;  %v612_v36 = vsel %vm364_vm1, %v544_v59, 0.0  ;;  %v545_v8 = vmul.f32 %v2197_v54, %v2197_v54 }
 0x19b   :  { %610 = vadd.xlane.f32.xlu1 %v609_v37  ;;  %613 = vadd.xlane.f32.xlu0 %v612_v36  ;;  %v433_v6 = vpop.xlane.xlu0 %432 }
 0x19c   :  { %v2212_v7 = vsub.f32 %v2025_v42, %v483_v4  ;;  %v484_v9 = vmul.f32 0.015625, %v433_v6  ;;  %v546_v14 = vmul.f32 %v2206_v3, %v2206_v3  ;;  %v615_v39 = vsel %vm364_vm1, %v545_v8, 0.0 }
 0x19d   :  { %v436_v12 = vpop.xlane.xlu1 %435 }
 0x19e   :  { %v2221_v16 = vsub.f32 %v2033_v35, %v484_v9  ;;  %v485_v13 = vmul.f32 0.015625, %v436_v12  ;;  %v618_v42 = vsel %vm364_vm1, %v546_v14, 0.0  ;;  %v547_v20 = vmul.f32 %v2212_v7, %v2212_v7 }
 0x19f   :  { %616 = vadd.xlane.f32.xlu1 %v615_v39  ;;  %619 = vadd.xlane.f32.xlu0 %v618_v42  ;;  %v439_v33 = vpop.xlane.xlu0 %438 }
 0x1a0   :  { %v2227_v24 = vsub.f32 %v2039_v48, %v485_v13  ;;  %v486_v18 = vmul.f32 0.015625, %v439_v33  ;;  %v548_v34 = vmul.f32 %v2221_v16, %v2221_v16  ;;  %v621_v35 = vsel %vm364_vm1, %v547_v20, 0.0 }
 0x1a1   :  { %v442_v38 = vpop.xlane.xlu1 %441 }
 0x1a2   :  { %v2236_v23 = vsub.f32 %v2042_v51, %v486_v18  ;;  %v487_v62 = vmul.f32 0.015625, %v442_v38  ;;  %v624_v48 = vsel %vm364_vm1, %v548_v34, 0.0  ;;  %v549_v43 = vmul.f32 %v2227_v24, %v2227_v24 }
 0x1a3   :  { %622 = vadd.xlane.f32.xlu1 %v621_v35  ;;  %625 = vadd.xlane.f32.xlu0 %v624_v48  ;;  %v445_v47 = vpop.xlane.xlu0 %444 }
 0x1a4   :  { %v2242_v30 = vsub.f32 %v2047_v53, %v487_v62  ;;  %v488_v61 = vmul.f32 0.015625, %v445_v47  ;;  %v550_v55 = vmul.f32 %v2236_v23, %v2236_v23  ;;  %v627_v51 = vsel %vm364_vm1, %v549_v43, 0.0  ;;  %v1728_v47 = vld [vmem:[%s2638_s3 + $0x8] sm:$0xff]  }
 0x1a5   :  { %v448_v59 = vpop.xlane.xlu1 %447 }
 0x1a6   :  { %v2248_v2 = vsub.f32 %v2055_v49, %v488_v61  ;;  %v489_v37 = vmul.f32 0.015625, %v448_v59  ;;  %v630_v0 = vsel %vm364_vm1, %v550_v55, 0.0  ;;  %v551_v4 = vmul.f32 %v2242_v30, %v2242_v30 }
 0x1a7   :  { %628 = vadd.xlane.f32.xlu1 %v627_v51  ;;  %631 = vadd.xlane.f32.xlu0 %v630_v0  ;;  %v451_v53 = vpop.xlane.xlu0 %450 }
 0x1a8   :  { %v2254_v36 = vsub.f32 %v2060_v57, %v489_v37  ;;  %v490_v8 = vmul.f32 0.015625, %v451_v53  ;;  %v552_v6 = vmul.f32 %v2248_v2, %v2248_v2  ;;  %v633_v49 = vsel %vm364_vm1, %v551_v4, 0.0 }
 0x1a9   :  { %v454_v9 = vpop.xlane.xlu1 %453 }
 0x1aa   :  { %v2260_v14 = vsub.f32 %v2063_v58, %v490_v8  ;;  %v491_v12 = vmul.f32 0.015625, %v454_v9  ;;  %v636_v39 = vsel %vm364_vm1, %v552_v6, 0.0  ;;  %v553_v15 = vmul.f32 %v2254_v36, %v2254_v36 }
 0x1ab   :  { %634 = vadd.xlane.f32.xlu1 %v633_v49  ;;  %637 = vadd.xlane.f32.xlu0 %v636_v39  ;;  %v457_v57 = vpop.xlane.xlu0 %456  ;;  %v784_v39 = vsub.s32 1, %v1894_v19 }
 0x1ac   :  { %v2266_v13 = vsub.f32 %v2068_v63, %v491_v12  ;;  %v492_v42 = vmul.f32 0.015625, %v457_v57  ;;  %v554_v20 = vmul.f32 %v2260_v14, %v2260_v14  ;;  %v639_v58 = vsel %vm364_vm1, %v553_v15, 0.0 }
 0x1ad   :  { %v460_v33 = vpop.xlane.xlu1 %459 }
 0x1ae   :  { %v2272_v18 = vsub.f32 %v2075_v1, %v492_v42  ;;  %v493_v34 = vmul.f32 0.015625, %v460_v33  ;;  %v642_v38 = vsel %vm364_vm1, %v554_v20, 0.0  ;;  %v555_v35 = vmul.f32 %v2266_v13, %v2266_v13 }
 0x1af   :  { %640 = vadd.xlane.f32.xlu1 %v639_v58  ;;  %643 = vadd.xlane.f32.xlu0 %v642_v38  ;;  %v820_v42 = vsub.s32 2, %v1894_v19  ;;  %v2296_v38 = vrot.slane %v1900_v21, %v784_v39 }
 0x1b0   :  { %v2278_v63 = vsub.f32 %v1997_v25, %v493_v34  ;;  %v556_v40 = vmul.f32 %v2272_v18, %v2272_v18  ;;  %v645_v62 = vsel %vm364_vm1, %v555_v35, 0.0  ;;  %v1727_v25 = vld [vmem:[%s2638_s3] sm:$0xff]  }
 0x1b1   :  { %1665 = vmatprep.subr.bf16.mxu0 %v1727_v25 }
 0x1b2   :  { %v648_v48 = vsel %vm364_vm1, %v556_v40, 0.0  ;;  %v557_v1 = vmul.f32 %v2278_v63, %v2278_v63  ;;  %1666 = vmatpush3.bf16.msra.mxu0 %v1727_v25 }
 0x1b3   :  { %646 = vadd.xlane.f32.xlu1 %v645_v62  ;;  %649 = vadd.xlane.f32.xlu0 %v648_v48  ;;  %v2299_v48 = vrot.slane %v1900_v21, %v820_v42 }
 0x1b4   :  { %v651_v43 = vsel %vm364_vm1, %v557_v1, 0.0  ;;  %1667 = vmatprep.subr.bf16.mxu0 %v1728_v47 }
 0x1b6   :  { %1668 = vmatpush3.bf16.msra.mxu0 %v1728_v47 }
 0x1b7   :  { %652 = vadd.xlane.f32.xlu1 %v651_v43 }
 0x204   :  { %v560_v61 = vpop.xlane.xlu0 %559 }
 0x205   :  { %v654_v55 = vmul.f32 0.015625, %v560_v61 }
 0x207   :  { %v686_v59 = vadd.f32 1e-05, %v654_v55 }
 0x208   :  { %v563_v51 = vpop.xlane.xlu1 %562  ;;  %v566_v37 = vpop.xlane.xlu0 %565 }
 0x209   :  { %1729 = vrsqrt.f32 %v686_v59  ;;  %v655_v0 = vmul.f32 0.015625, %v563_v51  ;;  %v656_v4 = vmul.f32 0.015625, %v566_v37 }
 0x20b   :  { %v687_v53 = vadd.f32 1e-05, %v655_v0  ;;  %v688_v8 = vadd.f32 1e-05, %v656_v4 }
 0x20c   :  { %v569_v6 = vpop.xlane.xlu1 %568  ;;  %v572_v9 = vpop.xlane.xlu0 %571 }
 0x20d   :  { %1731 = vrsqrt.f32 %v687_v53  ;;  %v657_v49 = vmul.f32 0.015625, %v569_v6  ;;  %v658_v12 = vmul.f32 0.015625, %v572_v9 }
 0x20e   :  { %1733 = vrsqrt.f32 %v688_v8 }
 0x20f   :  { %v689_v15 = vadd.f32 1e-05, %v657_v49  ;;  %v690_v57 = vadd.f32 1e-05, %v658_v12 }
 0x210   :  { %v575_v20 = vpop.xlane.xlu1 %574  ;;  %v578_v33 = vpop.xlane.xlu0 %577 }
 0x211   :  { %1735 = vrsqrt.f32 %v689_v15  ;;  %v659_v58 = vmul.f32 0.015625, %v575_v20  ;;  %v660_v34 = vmul.f32 0.015625, %v578_v33 }
 0x212   :  { %1737 = vrsqrt.f32 %v690_v57 }
 0x213   :  { %v1730_v35 = vpop.eup %1729  ;;  %v691_v40 = vadd.f32 1e-05, %v659_v58  ;;  %v692_v62 = vadd.f32 1e-05, %v660_v34 }
 0x214   :  { %v750_v1 = vmul.f32 %v1730_v35, %v2087_v11  ;;  %v581_v43 = vpop.xlane.xlu1 %580  ;;  %v584_v25 = vpop.xlane.xlu0 %583 }
 0x215   :  { %1739 = vrsqrt.f32 %v691_v40  ;;  %v661_v47 = vmul.f32 0.015625, %v581_v43  ;;  %v662_v61 = vmul.f32 0.015625, %v584_v25 }
 0x216   :  { %1741 = vrsqrt.f32 %v692_v62  ;;  %v786_v55 = vmul.f32 %v2296_v38, %v750_v1 }
 0x217   :  { %v1732_v59 = vpop.eup %1731  ;;  %v693_v51 = vadd.f32 1e-05, %v661_v47  ;;  %v694_v37 = vadd.f32 1e-05, %v662_v61 }
 0x218   :  { %v1734_v0 = vpop.eup %1733  ;;  %v751_v4 = vmul.f32 %v1732_v59, %v2095_v29  ;;  %v587_v53 = vpop.xlane.xlu1 %586  ;;  %v822_v21 = vadd.f32 %v2299_v48, %v786_v55 }
 0x219   :  { %v590_v8 = vpop.xlane.xlu0 %589  ;;  %v752_v11 = vmul.f32 %v1734_v0, %v2084_v22  ;;  %1743 = vrsqrt.f32 %v693_v51  ;;  %v663_v6 = vmul.f32 0.015625, %v587_v53 }
 0x21a   :  { %v664_v9 = vmul.f32 0.015625, %v590_v8  ;;  %1745 = vrsqrt.f32 %v694_v37  ;;  %v787_v49 = vmul.f32 %v2296_v38, %v751_v4  ;;  %v854_v34 = vmax.f32 %v822_v21, 0.0 }
 0x21b   :  { %v1736_v12 = vpop.eup %1735  ;;  %v788_v39 = vmul.f32 %v2296_v38, %v752_v11  ;;  %v695_v15 = vadd.f32 1e-05, %v663_v6 }
 0x21c   :  { %v696_v57 = vadd.f32 1e-05, %v664_v9  ;;  %v1738_v42 = vpop.eup %1737  ;;  %v753_v29 = vmul.f32 %v1736_v12, %v2092_v27  ;;  %v593_v20 = vpop.xlane.xlu1 %592  ;;  %v823_v58 = vadd.f32 %v2299_v48, %v787_v49 }
 0x21d   :  { %v596_v33 = vpop.xlane.xlu0 %595  ;;  %v824_v22 = vadd.f32 %v2299_v48, %v788_v39  ;;  %v754_v35 = vmul.f32 %v1738_v42, %v2105_v28  ;;  %1747 = vrsqrt.f32 %v695_v15  ;;  %v665_v40 = vmul.f32 0.015625, %v593_v20 }
 0x21e   :  { %v789_v62 = vmul.f32 %v2296_v38, %v753_v29  ;;  %1749 = vrsqrt.f32 %v696_v57  ;;  %v666_v1 = vmul.f32 0.015625, %v596_v33  ;;  %v855_v43 = vmax.f32 %v823_v58, 0.0 }
 0x21f   :  { %v1740_v25 = vpop.eup %1739  ;;  %v856_v47 = vmax.f32 %v824_v22, 0.0  ;;  %v697_v61 = vadd.f32 1e-05, %v665_v40  ;;  %v790_v27 = vmul.f32 %v2296_v38, %v754_v35 }
 0x220   :  { %v1742_v55 = vpop.eup %1741  ;;  %v825_v59 = vadd.f32 %v2299_v48, %v789_v62  ;;  %v755_v51 = vmul.f32 %v1740_v25, %v2110_v44  ;;  %v698_v37 = vadd.f32 1e-05, %v666_v1  ;;  %v599_v0 = vpop.xlane.xlu1 %598  ;;  %v886_v4 = vpack.c.bf16 %v855_v43, %v854_v34 }
 0x221   :  { %v602_v28 = vpop.xlane.xlu0 %601  ;;  %v756_v53 = vmul.f32 %v1742_v55, %v2116_v41  ;;  %1751 = vrsqrt.f32 %v697_v61  ;;  %v667_v8 = vmul.f32 0.015625, %v599_v0  ;;  %v826_v9 = vadd.f32 %v2299_v48, %v790_v27 }
 0x222   :  { %v668_v21 = vmul.f32 0.015625, %v602_v28  ;;  %v857_v11 = vmax.f32 %v825_v59, 0.0  ;;  %1753 = vrsqrt.f32 %v698_v37  ;;  %1633 = vmatprep.mubr.msk.bf16.mxu1 %vm364_vm1, %v886_v4  ;;  %v791_v6 = vmul.f32 %v2296_v38, %v755_v51 }
 0x223   :  { %v1744_v49 = vpop.eup %1743  ;;  %v699_v12 = vadd.f32 1e-05, %v667_v8  ;;  %v792_v39 = vmul.f32 %v2296_v38, %v756_v53  ;;  %v858_v33 = vmax.f32 %v826_v9, 0.0 }
 0x224   :  { %v700_v44 = vadd.f32 1e-05, %v668_v21  ;;  %v1746_v15 = vpop.eup %1745  ;;  %v757_v57 = vmul.f32 %v1744_v49, %v2122_v5  ;;  %v605_v41 = vpop.xlane.xlu1 %604  ;;  %v887_v29 = vpack.c.bf16 %v857_v11, %v856_v47  ;;  %v827_v20 = vadd.f32 %v2299_v48, %v791_v6 }
 0x225   :  { %v608_v42 = vpop.xlane.xlu0 %607  ;;  %v758_v58 = vmul.f32 %v1746_v15, %v2128_v10  ;;  %1755 = vrsqrt.f32 %v699_v12  ;;  %v669_v34 = vmul.f32 0.015625, %v605_v41  ;;  %v828_v62 = vadd.f32 %v2299_v48, %v792_v39 }
 0x226   :  { %v670_v22 = vmul.f32 0.015625, %v608_v42  ;;  %1757 = vrsqrt.f32 %v700_v44  ;;  %1634 = vmatmul.mubr.msk.bf16.vlgmr.msra.gmra.mrb[16].mxu1 %vm364_vm1, %v887_v29  ;;  %v859_v35 = vmax.f32 %v827_v20, 0.0  ;;  %v793_v40 = vmul.f32 %v2296_v38, %v757_v57 }
 0x227   :  { %v1748_v5 = vpop.eup %1747  ;;  %v701_v1 = vadd.f32 1e-05, %v669_v34  ;;  %v794_v25 = vmul.f32 %v2296_v38, %v758_v58  ;;  %v860_v51 = vmax.f32 %v828_v62, 0.0 }
 0x228   :  { %v702_v43 = vadd.f32 1e-05, %v670_v22  ;;  %v1750_v47 = vpop.eup %1749  ;;  %v759_v61 = vmul.f32 %v1748_v5, %v2134_v17  ;;  %v611_v10 = vpop.xlane.xlu1 %610  ;;  %v888_v55 = vpack.c.bf16 %v859_v35, %v858_v33  ;;  %v829_v59 = vadd.f32 %v2299_v48, %v793_v40 }
 0x229   :  { %v614_v27 = vpop.xlane.xlu0 %613  ;;  %v760_v37 = vmul.f32 %v1750_v47, %v2140_v26  ;;  %1759 = vrsqrt.f32 %v701_v1  ;;  %v671_v0 = vmul.f32 0.015625, %v611_v10  ;;  %v830_v8 = vadd.f32 %v2299_v48, %v794_v25 }
 0x22a   :  { %v672_v28 = vmul.f32 0.015625, %v614_v27  ;;  %1761 = vrsqrt.f32 %v702_v43  ;;  %1637 = vmatprep.mubr.msk.bf16.mxu1 %vm364_vm1, %v888_v55  ;;  %v861_v4 = vmax.f32 %v829_v59, 0.0  ;;  %v795_v53 = vmul.f32 %v2296_v38, %v759_v61 }
 0x22b   :  { %v1752_v17 = vpop.eup %1751  ;;  %v703_v21 = vadd.f32 1e-05, %v671_v0  ;;  %v796_v6 = vmul.f32 %v2296_v38, %v760_v37  ;;  %v862_v15 = vmax.f32 %v830_v8, 0.0 }
 0x22c   :  { %v704_v11 = vadd.f32 1e-05, %v672_v28  ;;  %v1754_v9 = vpop.eup %1753  ;;  %v761_v49 = vmul.f32 %v1752_v17, %v2146_v31  ;;  %v617_v26 = vpop.xlane.xlu1 %616  ;;  %v889_v44 = vpack.c.bf16 %v861_v4, %v860_v51  ;;  %v831_v39 = vadd.f32 %v2299_v48, %v795_v53 }
 0x22d   :  { %v620_v12 = vpop.xlane.xlu0 %619  ;;  %v762_v57 = vmul.f32 %v1754_v9, %v2152_v52  ;;  %1763 = vrsqrt.f32 %v703_v21  ;;  %v673_v41 = vmul.f32 0.015625, %v617_v26  ;;  %v832_v33 = vadd.f32 %v2299_v48, %v796_v6 }
 0x22e   :  { %v674_v42 = vmul.f32 0.015625, %v620_v12  ;;  %1765 = vrsqrt.f32 %v704_v11  ;;  %1638 = vmatmul.mubr.msk.bf16.gmra.mrb[20].mxu1 %vm364_vm1, %v889_v44  ;;  %v863_v29 = vmax.f32 %v831_v39, 0.0  ;;  %v797_v20 = vmul.f32 %v2296_v38, %v761_v49 }
 0x22f   :  { %v1756_v31 = vpop.eup %1755  ;;  %v705_v58 = vadd.f32 1e-05, %v673_v41  ;;  %v798_v22 = vmul.f32 %v2296_v38, %v762_v57  ;;  %v864_v43 = vmax.f32 %v832_v33, 0.0 }
 0x230   :  { %v706_v34 = vadd.f32 1e-05, %v674_v42  ;;  %v1758_v35 = vpop.eup %1757  ;;  %v763_v40 = vmul.f32 %v1756_v31, %v2158_v60  ;;  %v623_v52 = vpop.xlane.xlu1 %622  ;;  %v890_v5 = vpack.c.bf16 %v863_v29, %v862_v15  ;;  %v833_v1 = vadd.f32 %v2299_v48, %v797_v20 }
 0x231   :  { %v626_v62 = vpop.xlane.xlu0 %625  ;;  %v764_v25 = vmul.f32 %v1758_v35, %v2164_v46  ;;  %1767 = vrsqrt.f32 %v705_v58  ;;  %v675_v47 = vmul.f32 0.015625, %v623_v52  ;;  %v834_v55 = vadd.f32 %v2299_v48, %v798_v22 }
 0x232   :  { %v676_v61 = vmul.f32 0.015625, %v626_v62  ;;  %1769 = vrsqrt.f32 %v706_v34  ;;  %1641 = vmatprep.mubr.msk.bf16.mxu1 %vm364_vm1, %v890_v5  ;;  %v865_v10 = vmax.f32 %v833_v1, 0.0  ;;  %v799_v27 = vmul.f32 %v2296_v38, %v763_v40 }
 0x233   :  { %v1760_v60 = vpop.eup %1759  ;;  %v707_v59 = vadd.f32 1e-05, %v675_v47  ;;  %v800_v37 = vmul.f32 %v2296_v38, %v764_v25  ;;  %v866_v17 = vmax.f32 %v834_v55, 0.0 }
 0x234   :  { %v708_v51 = vadd.f32 1e-05, %v676_v61  ;;  %v1762_v0 = vpop.eup %1761  ;;  %v765_v28 = vmul.f32 %v1760_v60, %v2170_v45  ;;  %v629_v46 = vpop.xlane.xlu1 %628  ;;  %v891_v53 = vpack.c.bf16 %v865_v10, %v864_v43  ;;  %v835_v8 = vadd.f32 %v2299_v48, %v799_v27 }
 0x235   :  { %v632_v4 = vpop.xlane.xlu0 %631  ;;  %v766_v21 = vmul.f32 %v1762_v0, %v2176_v50  ;;  %1771 = vrsqrt.f32 %v707_v59  ;;  %v677_v11 = vmul.f32 0.015625, %v629_v46  ;;  %v836_v26 = vadd.f32 %v2299_v48, %v800_v37 }
 0x236   :  { %v678_v6 = vmul.f32 0.015625, %v632_v4  ;;  %1773 = vrsqrt.f32 %v708_v51  ;;  %1642 = vmatmul.mubr.msk.bf16.gmra.mrb[24].mxu1 %vm364_vm1, %v891_v53  ;;  %v867_v9 = vmax.f32 %v835_v8, 0.0  ;;  %v801_v49 = vmul.f32 %v2296_v38, %v765_v28 }
 0x237   :  { %v1764_v45 = vpop.eup %1763  ;;  %v709_v12 = vadd.f32 1e-05, %v677_v11  ;;  %v802_v39 = vmul.f32 %v2296_v38, %v766_v21  ;;  %v868_v20 = vmax.f32 %v836_v26, 0.0 }
 0x238   :  { %v710_v44 = vadd.f32 1e-05, %v678_v6  ;;  %v1766_v15 = vpop.eup %1765  ;;  %v767_v57 = vmul.f32 %v1764_v45, %v2182_v56  ;;  %v635_v50 = vpop.xlane.xlu1 %634  ;;  %v892_v42 = vpack.c.bf16 %v867_v9, %v866_v17  ;;  %v837_v29 = vadd.f32 %v2299_v48, %v801_v49 }
 0x239   :  { %v638_v41 = vpop.xlane.xlu0 %637  ;;  %v768_v33 = vmul.f32 %v1766_v15, %v2191_v32  ;;  %1775 = vrsqrt.f32 %v709_v12  ;;  %v679_v31 = vmul.f32 0.015625, %v635_v50  ;;  %v838_v35 = vadd.f32 %v2299_v48, %v802_v39 }
 0x23a   :  { %v680_v58 = vmul.f32 0.015625, %v638_v41  ;;  %1777 = vrsqrt.f32 %v710_v44  ;;  %1645 = vmatprep.mubr.msk.bf16.mxu1 %vm364_vm1, %v892_v42  ;;  %v869_v34 = vmax.f32 %v837_v29, 0.0  ;;  %v803_v22 = vmul.f32 %v2296_v38, %v767_v57 }
 0x23b   :  { %v1768_v56 = vpop.eup %1767  ;;  %v711_v40 = vadd.f32 1e-05, %v679_v31  ;;  %v804_v62 = vmul.f32 %v2296_v38, %v768_v33  ;;  %v870_v61 = vmax.f32 %v838_v35, 0.0 }
 0x23c   :  { %v712_v52 = vadd.f32 1e-05, %v680_v58  ;;  %v1770_v5 = vpop.eup %1769  ;;  %v769_v1 = vmul.f32 %v1768_v56, %v2197_v54  ;;  %v641_v32 = vpop.xlane.xlu1 %640  ;;  %v893_v25 = vpack.c.bf16 %v869_v34, %v868_v20  ;;  %v839_v47 = vadd.f32 %v2299_v48, %v803_v22 }
 0x23d   :  { %v644_v43 = vpop.xlane.xlu0 %643  ;;  %v770_v10 = vmul.f32 %v1770_v5, %v2206_v3  ;;  %1779 = vrsqrt.f32 %v711_v40  ;;  %v681_v27 = vmul.f32 0.015625, %v641_v32  ;;  %v840_v51 = vadd.f32 %v2299_v48, %v804_v62 }
 0x23e   :  { %v682_v55 = vmul.f32 0.015625, %v644_v43  ;;  %1781 = vrsqrt.f32 %v712_v52  ;;  %1646 = vmatmul.mubr.msk.bf16.gmra.mrb[28].mxu1 %vm364_vm1, %v893_v25  ;;  %v871_v60 = vmax.f32 %v839_v47, 0.0  ;;  %v805_v59 = vmul.f32 %v2296_v38, %v769_v1 }
 0x23f   :  { %v1772_v54 = vpop.eup %1771  ;;  %v713_v37 = vadd.f32 1e-05, %v681_v27  ;;  %v806_v28 = vmul.f32 %v2296_v38, %v770_v10  ;;  %v872_v21 = vmax.f32 %v840_v51, 0.0 }
 0x240   :  { %v714_v0 = vadd.f32 1e-05, %v682_v55  ;;  %v1774_v46 = vpop.eup %1773  ;;  %v771_v4 = vmul.f32 %v1772_v54, %v2212_v7  ;;  %v647_v3 = vpop.xlane.xlu1 %646  ;;  %v894_v8 = vpack.c.bf16 %v871_v60, %v870_v61  ;;  %v841_v17 = vadd.f32 %v2299_v48, %v805_v59 }
 0x241   :  { %v650_v53 = vpop.xlane.xlu0 %649  ;;  %v772_v11 = vmul.f32 %v1774_v46, %v2221_v16  ;;  %1783 = vrsqrt.f32 %v713_v37  ;;  %v683_v6 = vmul.f32 0.015625, %v647_v3  ;;  %v842_v45 = vadd.f32 %v2299_v48, %v806_v28 }
 0x242   :  { %v684_v9 = vmul.f32 0.015625, %v650_v53  ;;  %1785 = vrsqrt.f32 %v714_v0  ;;  %1649 = vmatprep.mubr.msk.bf16.mxu1 %vm364_vm1, %v894_v8  ;;  %v873_v49 = vmax.f32 %v841_v17, 0.0  ;;  %v807_v26 = vmul.f32 %v2296_v38, %v771_v4 }
 0x243   :  { %v1776_v7 = vpop.eup %1775  ;;  %v715_v12 = vadd.f32 1e-05, %v683_v6  ;;  %v808_v39 = vmul.f32 %v2296_v38, %v772_v11  ;;  %v874_v20 = vmax.f32 %v842_v45, 0.0 }
 0x244   :  { %v716_v44 = vadd.f32 1e-05, %v684_v9  ;;  %v1778_v15 = vpop.eup %1777  ;;  %v773_v57 = vmul.f32 %v1776_v7, %v2227_v24  ;;  %v653_v16 = vpop.xlane.xlu1 %652  ;;  %v895_v50 = vpack.c.bf16 %v873_v49, %v872_v21  ;;  %v843_v41 = vadd.f32 %v2299_v48, %v807_v26 }
 0x245   :  { %v774_v42 = vmul.f32 %v1778_v15, %v2236_v23  ;;  %1787 = vrsqrt.f32 %v715_v12  ;;  %v685_v29 = vmul.f32 0.015625, %v653_v16  ;;  %v844_v58 = vadd.f32 %v2299_v48, %v808_v39  ;;  %v2417_v39 = vld [vmem:[%s2636_s4] sm:$0x1f] }
 0x246   :  { %1789 = vrsqrt.f32 %v716_v44  ;;  %1650 = vmatmul.mubr.msk.bf16.gmra.mrb[32].mxu1 %vm364_vm1, %v895_v50  ;;  %v875_v33 = vmax.f32 %v843_v41, 0.0  ;;  %v809_v31 = vmul.f32 %v2296_v38, %v773_v57 }
 0x247   :  { %v1780_v34 = vpop.eup %1779  ;;  %v717_v22 = vadd.f32 1e-05, %v685_v29  ;;  %v810_v24 = vmul.f32 %v2296_v38, %v774_v42  ;;  %v876_v62 = vmax.f32 %v844_v58, 0.0 }
 0x248   :  { %v1782_v35 = vpop.eup %1781  ;;  %v775_v56 = vmul.f32 %v1780_v34, %v2242_v30  ;;  %v896_v40 = vpack.c.bf16 %v875_v33, %v874_v20  ;;  %v845_v23 = vadd.f32 %v2299_v48, %v809_v31 }
 0x249   :  { %v776_v52 = vmul.f32 %v1782_v35, %v2248_v2  ;;  %1791 = vrsqrt.f32 %v717_v22  ;;  %v846_v32 = vadd.f32 %v2299_v48, %v810_v24 }
 0x24a   :  { %1653 = vmatprep.mubr.msk.bf16.mxu1 %vm364_vm1, %v896_v40  ;;  %v877_v5 = vmax.f32 %v845_v23, 0.0  ;;  %v811_v1 = vmul.f32 %v2296_v38, %v775_v56 }
 0x24b   :  { %v1784_v43 = vpop.eup %1783  ;;  %v812_v25 = vmul.f32 %v2296_v38, %v776_v52  ;;  %v878_v27 = vmax.f32 %v846_v32, 0.0 }
 0x24c   :  { %v1786_v47 = vpop.eup %1785  ;;  %v777_v30 = vmul.f32 %v1784_v43, %v2254_v36  ;;  %v897_v61 = vpack.c.bf16 %v877_v5, %v876_v62  ;;  %v847_v10 = vadd.f32 %v2299_v48, %v811_v1 }
 0x24d   :  { %v778_v2 = vmul.f32 %v1786_v47, %v2260_v14  ;;  %v848_v59 = vadd.f32 %v2299_v48, %v812_v25 }
 0x24e   :  { %1654 = vmatmul.mubr.msk.bf16.gmra.mrb[36].mxu1 %vm364_vm1, %v897_v61  ;;  %v879_v55 = vmax.f32 %v847_v10, 0.0  ;;  %v813_v60 = vmul.f32 %v2296_v38, %v777_v30 }
 0x24f   :  { %v1788_v51 = vpop.eup %1787  ;;  %v814_v54 = vmul.f32 %v2296_v38, %v778_v2  ;;  %v880_v14 = vmax.f32 %v848_v59, 0.0 }
 0x250   :  { %v1790_v37 = vpop.eup %1789  ;;  %v779_v0 = vmul.f32 %v1788_v51, %v2266_v13  ;;  %v898_v36 = vpack.c.bf16 %v879_v55, %v878_v27  ;;  %v849_v28 = vadd.f32 %v2299_v48, %v813_v60 }
 0x251   :  { %v780_v46 = vmul.f32 %v1790_v37, %v2272_v18  ;;  %v850_v53 = vadd.f32 %v2299_v48, %v814_v54 }
 0x252   :  { %1657 = vmatprep.mubr.msk.bf16.mxu1 %vm364_vm1, %v898_v36  ;;  %v881_v4 = vmax.f32 %v849_v28, 0.0  ;;  %v815_v3 = vmul.f32 %v2296_v38, %v779_v0 }
 0x253   :  { %v1792_v8 = vpop.eup %1791  ;;  %v816_v17 = vmul.f32 %v2296_v38, %v780_v46  ;;  %v882_v6 = vmax.f32 %v850_v53, 0.0 }
 0x254   :  { %v781_v21 = vmul.f32 %v1792_v8, %v2278_v63  ;;  %v899_v11 = vpack.c.bf16 %v881_v4, %v880_v14  ;;  %v851_v13 = vadd.f32 %v2299_v48, %v815_v3  ;;  %v912_v63 = vsub.s32 3, %v1894_v19 }
 0x255   :  { %v852_v49 = vadd.f32 %v2299_v48, %v816_v17 }
 0x256   :  { %1658 = vmatmul.mubr.msk.bf16.gmra.mrb[40].mxu1 %vm364_vm1, %v899_v11  ;;  %v883_v18 = vmax.f32 %v851_v13, 0.0  ;;  %v817_v9 = vmul.f32 %v2296_v38, %v781_v21  ;;  %v2420_v38 = vrot.slane %v2417_v39, %v912_v63 }
 0x257   :  { %v884_v7 = vmax.f32 %v852_v49, 0.0 }
 0x258   :  { %v900_v26 = vpack.c.bf16 %v883_v18, %v882_v6  ;;  %v853_v45 = vadd.f32 %v2299_v48, %v817_v9 }
 0x25a   :  { %1661 = vmatprep.mubr.msk.bf16.mxu1 %vm364_vm1, %v900_v26  ;;  %v885_v12 = vmax.f32 %v853_v45, 0.0 }
 0x25c   :  { %v901_v44 = vpack.c.bf16 %v885_v12, %v884_v7 }
 0x25e   :  { %1662 = vmatmul.mubr.msk.bf16.gmra.mrb[44].mxu1 %vm364_vm1, %v901_v44 }
 0x2f9   :  { %v1635_v15 = vpop.f32.mrb[16].mxu1 }
 0x2fa   :  { %v1029_v48 = vadd.f32 %v1635_v15, %v2420_v38  ;;  %v1020_v57 = vpop.f32.mrb[17].mxu1 }
 0x2fb   :  { %v1021_v16 = vadd.f32 %v1020_v57, %v2420_v38  ;;  %v1636_v50 = vpop.f32.mrb[18].mxu1 }
 0x2fc   :  { %v1032_v41 = vadd.f32 %v1636_v50, %v2420_v38  ;;  %v1023_v42 = vpop.f32.mrb[19].mxu1  ;;  %v1149_v20 = vmax.f32 %v1029_v48, 0.0 }
 0x2fd   :  { %v1024_v29 = vadd.f32 %v1023_v42, %v2420_v38  ;;  %v1147_v31 = vmax.f32 %v1021_v16, 0.0 }
 0x2fe   :  { %v1150_v33 = vmax.f32 %v1032_v41, 0.0 }
 0x2ff   :  { %v1148_v58 = vmax.f32 %v1024_v29, 0.0 }
 0x300   :  { %v1180_v34 = vpack.c.bf16 %v1150_v33, %v1149_v20 }
 0x301   :  { %v1179_v22 = vpack.c.bf16 %v1148_v58, %v1147_v31  ;;  %v1639_v24 = vpop.f32.mrb[20].mxu1 }
 0x302   :  { %v1045_v35 = vadd.f32 %v1639_v24, %v2420_v38  ;;  %v1036_v56 = vpop.f32.mrb[21].mxu1 }
 0x303   :  { %v1037_v40 = vadd.f32 %v1036_v56, %v2420_v38  ;;  %v1640_v23 = vpop.f32.mrb[22].mxu1  ;;  %1669 = vmatprep.mubr.msk.bf16.mxu0 %vm154_vm0, %v1179_v22 }
 0x304   :  { %v1048_v52 = vadd.f32 %v1640_v23, %v2420_v38  ;;  %v1039_v62 = vpop.f32.mrb[23].mxu1  ;;  %1670 = vmatmul.mubr.msk.bf16.vlgmr.msra.gmra.mrb[16].mxu0 %vm154_vm0, %v1180_v34  ;;  %v1153_v1 = vmax.f32 %v1045_v35, 0.0 }
 0x305   :  { %v1040_v5 = vadd.f32 %v1039_v62, %v2420_v38  ;;  %v1151_v43 = vmax.f32 %v1037_v40, 0.0 }
 0x306   :  { %v1154_v32 = vmax.f32 %v1048_v52, 0.0 }
 0x307   :  { %v1152_v25 = vmax.f32 %v1040_v5, 0.0 }
 0x308   :  { %v1182_v47 = vpack.c.bf16 %v1154_v32, %v1153_v1 }
 0x309   :  { %v1181_v30 = vpack.c.bf16 %v1152_v25, %v1151_v43  ;;  %v1643_v61 = vpop.f32.mrb[24].mxu1 }
 0x30a   :  { %v1061_v10 = vadd.f32 %v1643_v61, %v2420_v38  ;;  %v1052_v2 = vpop.f32.mrb[25].mxu1 }
 0x30b   :  { %v1053_v27 = vadd.f32 %v1052_v2, %v2420_v38  ;;  %v1644_v55 = vpop.f32.mrb[26].mxu1  ;;  %1673 = vmatprep.mubr.msk.bf16.mxu0 %vm154_vm0, %v1181_v30 }
 0x30c   :  { %v1064_v60 = vadd.f32 %v1644_v55, %v2420_v38  ;;  %v1055_v59 = vpop.f32.mrb[27].mxu1  ;;  %1674 = vmatmul.mubr.msk.bf16.gmra.mrb[20].mxu0 %vm154_vm0, %v1182_v47  ;;  %v1157_v54 = vmax.f32 %v1061_v10, 0.0 }
 0x30d   :  { %v1056_v51 = vadd.f32 %v1055_v59, %v2420_v38  ;;  %v1155_v0 = vmax.f32 %v1053_v27, 0.0 }
 0x30e   :  { %v1158_v37 = vmax.f32 %v1064_v60, 0.0 }
 0x30f   :  { %v1156_v36 = vmax.f32 %v1056_v51, 0.0 }
 0x310   :  { %v1184_v28 = vpack.c.bf16 %v1158_v37, %v1157_v54 }
 0x311   :  { %v1183_v46 = vpack.c.bf16 %v1156_v36, %v1155_v0  ;;  %v1647_v14 = vpop.f32.mrb[28].mxu1 }
 0x312   :  { %v1077_v4 = vadd.f32 %v1647_v14, %v2420_v38  ;;  %v1068_v3 = vpop.f32.mrb[29].mxu1 }
 0x313   :  { %v1069_v53 = vadd.f32 %v1068_v3, %v2420_v38  ;;  %v1648_v8 = vpop.f32.mrb[30].mxu1  ;;  %1677 = vmatprep.mubr.msk.bf16.mxu0 %vm154_vm0, %v1183_v46 }
 0x314   :  { %v1080_v17 = vadd.f32 %v1648_v8, %v2420_v38  ;;  %v1071_v21 = vpop.f32.mrb[31].mxu1  ;;  %1678 = vmatmul.mubr.msk.bf16.gmra.mrb[24].mxu0 %vm154_vm0, %v1184_v28  ;;  %v1161_v13 = vmax.f32 %v1077_v4, 0.0 }
 0x315   :  { %v1072_v11 = vadd.f32 %v1071_v21, %v2420_v38  ;;  %v1159_v18 = vmax.f32 %v1069_v53, 0.0 }
 0x316   :  { %v1162_v6 = vmax.f32 %v1080_v17, 0.0 }
 0x317   :  { %v1160_v9 = vmax.f32 %v1072_v11, 0.0 }
 0x318   :  { %v1186_v49 = vpack.c.bf16 %v1162_v6, %v1161_v13  ;;  %v1201_v6 = vsub.s32 4, %v1894_v19 }
 0x319   :  { %v1185_v26 = vpack.c.bf16 %v1160_v9, %v1159_v18  ;;  %v1651_v45 = vpop.f32.mrb[32].mxu1 }
 0x31a   :  { %v1093_v7 = vadd.f32 %v1651_v45, %v2420_v38  ;;  %v1084_v12 = vpop.f32.mrb[33].mxu1  ;;  %v2472_v18 = vrot.slane %v2417_v39, %v1201_v6 }
 0x31b   :  { %v1085_v44 = vadd.f32 %v1084_v12, %v2420_v38  ;;  %v1652_v63 = vpop.f32.mrb[34].mxu1  ;;  %1681 = vmatprep.mubr.msk.bf16.mxu0 %vm154_vm0, %v1185_v26 }
 0x31c   :  { %v1096_v15 = vadd.f32 %v1652_v63, %v2420_v38  ;;  %v1087_v48 = vpop.f32.mrb[35].mxu1  ;;  %1682 = vmatmul.mubr.msk.bf16.gmra.mrb[28].mxu0 %vm154_vm0, %v1186_v49  ;;  %v1165_v16 = vmax.f32 %v1093_v7, 0.0 }
 0x31d   :  { %v1088_v57 = vadd.f32 %v1087_v48, %v2420_v38  ;;  %v1163_v41 = vmax.f32 %v1085_v44, 0.0 }
 0x31e   :  { %v1166_v50 = vmax.f32 %v1096_v15, 0.0 }
 0x31f   :  { %v1164_v42 = vmax.f32 %v1088_v57, 0.0 }
 0x320   :  { %v1188_v29 = vpack.c.bf16 %v1166_v50, %v1165_v16 }
 0x321   :  { %v1187_v20 = vpack.c.bf16 %v1164_v42, %v1163_v41  ;;  %v1655_v33 = vpop.f32.mrb[36].mxu1 }
 0x322   :  { %v1109_v31 = vadd.f32 %v1655_v33, %v2420_v38  ;;  %v1100_v58 = vpop.f32.mrb[37].mxu1 }
 0x323   :  { %v1101_v34 = vadd.f32 %v1100_v58, %v2420_v38  ;;  %v1656_v22 = vpop.f32.mrb[38].mxu1  ;;  %1685 = vmatprep.mubr.msk.bf16.mxu0 %vm154_vm0, %v1187_v20 }
 0x324   :  { %v1112_v24 = vadd.f32 %v1656_v22, %v2420_v38  ;;  %v1103_v35 = vpop.f32.mrb[39].mxu1  ;;  %1686 = vmatmul.mubr.msk.bf16.gmra.mrb[32].mxu0 %vm154_vm0, %v1188_v29  ;;  %v1169_v40 = vmax.f32 %v1109_v31, 0.0 }
 0x325   :  { %v1104_v56 = vadd.f32 %v1103_v35, %v2420_v38  ;;  %v1167_v52 = vmax.f32 %v1101_v34, 0.0 }
 0x326   :  { %v1170_v23 = vmax.f32 %v1112_v24, 0.0 }
 0x327   :  { %v1168_v62 = vmax.f32 %v1104_v56, 0.0 }
 0x328   :  { %v1190_v5 = vpack.c.bf16 %v1170_v23, %v1169_v40 }
 0x329   :  { %v1189_v1 = vpack.c.bf16 %v1168_v62, %v1167_v52  ;;  %v1659_v32 = vpop.f32.mrb[40].mxu1 }
 0x32a   :  { %v1125_v43 = vadd.f32 %v1659_v32, %v2420_v38  ;;  %v1116_v25 = vpop.f32.mrb[41].mxu1 }
 0x32b   :  { %v1117_v47 = vadd.f32 %v1116_v25, %v2420_v38  ;;  %v1660_v30 = vpop.f32.mrb[42].mxu1  ;;  %1689 = vmatprep.mubr.msk.bf16.mxu0 %vm154_vm0, %v1189_v1 }
 0x32c   :  { %v1128_v61 = vadd.f32 %v1660_v30, %v2420_v38  ;;  %v1119_v10 = vpop.f32.mrb[43].mxu1  ;;  %1690 = vmatmul.mubr.msk.bf16.gmra.mrb[36].mxu0 %vm154_vm0, %v1190_v5  ;;  %v1173_v27 = vmax.f32 %v1125_v43, 0.0 }
 0x32d   :  { %v1120_v2 = vadd.f32 %v1119_v10, %v2420_v38  ;;  %v1171_v60 = vmax.f32 %v1117_v47, 0.0 }
 0x32e   :  { %v1174_v55 = vmax.f32 %v1128_v61, 0.0 }
 0x32f   :  { %v1172_v59 = vmax.f32 %v1120_v2, 0.0 }
 0x330   :  { %v1192_v51 = vpack.c.bf16 %v1174_v55, %v1173_v27 }
 0x331   :  { %v1191_v54 = vpack.c.bf16 %v1172_v59, %v1171_v60  ;;  %v1663_v37 = vpop.f32.mrb[44].mxu1 }
 0x332   :  { %v1141_v0 = vadd.f32 %v1663_v37, %v2420_v38  ;;  %v1132_v36 = vpop.f32.mrb[45].mxu1 }
 0x333   :  { %v1133_v28 = vadd.f32 %v1132_v36, %v2420_v38  ;;  %v1664_v46 = vpop.f32.mrb[46].mxu1  ;;  %1693 = vmatprep.mubr.msk.bf16.mxu0 %vm154_vm0, %v1191_v54 }
 0x334   :  { %v1144_v14 = vadd.f32 %v1664_v46, %v2420_v38  ;;  %v1135_v4 = vpop.f32.mrb[47].mxu1  ;;  %1694 = vmatmul.mubr.msk.bf16.gmra.mrb[40].mxu0 %vm154_vm0, %v1192_v51  ;;  %v1177_v53 = vmax.f32 %v1141_v0, 0.0 }
 0x335   :  { %v1136_v3 = vadd.f32 %v1135_v4, %v2420_v38  ;;  %v1175_v17 = vmax.f32 %v1133_v28, 0.0 }
 0x336   :  { %v1178_v8 = vmax.f32 %v1144_v14, 0.0 }
 0x337   :  { %v1176_v21 = vmax.f32 %v1136_v3, 0.0 }
 0x338   :  { %v1194_v11 = vpack.c.bf16 %v1178_v8, %v1177_v53 }
 0x339   :  { %v1193_v13 = vpack.c.bf16 %v1176_v21, %v1175_v17 }
 0x33b   :  { %1697 = vmatprep.mubr.msk.bf16.mxu0 %vm154_vm0, %v1193_v13 }
 0x33c   :  { %1698 = vmatmul.mubr.msk.bf16.gmra.mrb[44].mxu0 %vm154_vm0, %v1194_v11 }
 0x3d7   :  { %v1671_v9 = vpop.f32.mrb[16].mxu0 }
 0x3d8   :  { %v1306_v49 = vadd.f32 %v1671_v9, %v2472_v18  ;;  %v1297_v38 = vpop.f32.mrb[17].mxu0 }
 0x3d9   :  { %v1298_v26 = vadd.f32 %v1297_v38, %v2472_v18  ;;  %v1672_v45 = vpop.f32.mrb[18].mxu0 }
 0x3da   :  { %1427 = vst.msk [vmem:[%s2639_s5 + $0x10] sm:$0xff] %vm1424_vm2, %v1306_v49  ;;  %v1309_v7 = vadd.f32 %v1672_v45, %v2472_v18  ;;  %v1300_v12 = vpop.f32.mrb[19].mxu0 }
 0x3db   :  { %1425 = vst.msk [vmem:[%s2639_s5] sm:$0xff] %vm1424_vm2, %v1298_v26  ;;  %v1301_v19 = vadd.f32 %v1300_v12, %v2472_v18 }
 0x3dc   :  { %1428 = vst.msk [vmem:[%s2639_s5 + $0x18] sm:$0xff] %vm1424_vm2, %v1309_v7 }
 0x3dd   :  { %1426 = vst.msk [vmem:[%s2639_s5 + $0x8] sm:$0xff] %vm1424_vm2, %v1301_v19 }
 0x3df   :  { %v1675_v39 = vpop.f32.mrb[20].mxu0 }
 0x3e0   :  { %v1322_v44 = vadd.f32 %v1675_v39, %v2472_v18  ;;  %v1313_v63 = vpop.f32.mrb[21].mxu0 }
 0x3e1   :  { %v1314_v15 = vadd.f32 %v1313_v63, %v2472_v18  ;;  %v1676_v48 = vpop.f32.mrb[22].mxu0 }
 0x3e2   :  { %1431 = vst.msk [vmem:[%s2639_s5 + $0x30] sm:$0xff] %vm1424_vm2, %v1322_v44  ;;  %v1325_v57 = vadd.f32 %v1676_v48, %v2472_v18  ;;  %v1316_v16 = vpop.f32.mrb[23].mxu0 }
 0x3e3   :  { %1429 = vst.msk [vmem:[%s2639_s5 + $0x20] sm:$0xff] %vm1424_vm2, %v1314_v15  ;;  %v1317_v50 = vadd.f32 %v1316_v16, %v2472_v18 }
 0x3e4   :  { %1432 = vst.msk [vmem:[%s2639_s5 + $0x38] sm:$0xff] %vm1424_vm2, %v1325_v57 }
 0x3e5   :  { %1430 = vst.msk [vmem:[%s2639_s5 + $0x28] sm:$0xff] %vm1424_vm2, %v1317_v50 }
 0x3e7   :  { %v1679_v41 = vpop.f32.mrb[24].mxu0 }
 0x3e8   :  { %v1338_v42 = vadd.f32 %v1679_v41, %v2472_v18  ;;  %v1329_v29 = vpop.f32.mrb[25].mxu0 }
 0x3e9   :  { %v1330_v20 = vadd.f32 %v1329_v29, %v2472_v18  ;;  %v1680_v33 = vpop.f32.mrb[26].mxu0 }
 0x3ea   :  { %1435 = vst.msk [vmem:[%s2639_s5 + $0x50] sm:$0xff] %vm1424_vm2, %v1338_v42  ;;  %v1341_v31 = vadd.f32 %v1680_v33, %v2472_v18  ;;  %v1332_v58 = vpop.f32.mrb[27].mxu0 }
 0x3eb   :  { %1433 = vst.msk [vmem:[%s2639_s5 + $0x40] sm:$0xff] %vm1424_vm2, %v1330_v20  ;;  %v1333_v34 = vadd.f32 %v1332_v58, %v2472_v18 }
 0x3ec   :  { %1436 = vst.msk [vmem:[%s2639_s5 + $0x58] sm:$0xff] %vm1424_vm2, %v1341_v31 }
 0x3ed   :  { %1434 = vst.msk [vmem:[%s2639_s5 + $0x48] sm:$0xff] %vm1424_vm2, %v1333_v34 }
 0x3ef   :  { %v1683_v22 = vpop.f32.mrb[28].mxu0 }
 0x3f0   :  { %v1354_v24 = vadd.f32 %v1683_v22, %v2472_v18  ;;  %v1345_v35 = vpop.f32.mrb[29].mxu0 }
 0x3f1   :  { %v1346_v56 = vadd.f32 %v1345_v35, %v2472_v18  ;;  %v1684_v40 = vpop.f32.mrb[30].mxu0 }
 0x3f2   :  { %1439 = vst.msk [vmem:[%s2639_s5 + $0x70] sm:$0xff] %vm1424_vm2, %v1354_v24  ;;  %v1357_v23 = vadd.f32 %v1684_v40, %v2472_v18  ;;  %v1348_v52 = vpop.f32.mrb[31].mxu0 }
 0x3f3   :  { %1437 = vst.msk [vmem:[%s2639_s5 + $0x60] sm:$0xff] %vm1424_vm2, %v1346_v56  ;;  %v1349_v62 = vadd.f32 %v1348_v52, %v2472_v18 }
 0x3f4   :  { %1440 = vst.msk [vmem:[%s2639_s5 + $0x78] sm:$0xff] %vm1424_vm2, %v1357_v23 }
 0x3f5   :  { %1438 = vst.msk [vmem:[%s2639_s5 + $0x68] sm:$0xff] %vm1424_vm2, %v1349_v62 }
 0x3f7   :  { %v1687_v5 = vpop.f32.mrb[32].mxu0 }
 0x3f8   :  { %v1370_v1 = vadd.f32 %v1687_v5, %v2472_v18  ;;  %v1361_v32 = vpop.f32.mrb[33].mxu0 }
 0x3f9   :  { %v1362_v43 = vadd.f32 %v1361_v32, %v2472_v18  ;;  %v1688_v25 = vpop.f32.mrb[34].mxu0 }
 0x3fa   :  { %1443 = vst.msk [vmem:[%s2639_s5 + $0x90] sm:$0xff] %vm1424_vm2, %v1370_v1  ;;  %v1373_v47 = vadd.f32 %v1688_v25, %v2472_v18  ;;  %v1364_v30 = vpop.f32.mrb[35].mxu0 }
 0x3fb   :  { %1441 = vst.msk [vmem:[%s2639_s5 + $0x80] sm:$0xff] %vm1424_vm2, %v1362_v43  ;;  %v1365_v61 = vadd.f32 %v1364_v30, %v2472_v18 }
 0x3fc   :  { %1444 = vst.msk [vmem:[%s2639_s5 + $0x98] sm:$0xff] %vm1424_vm2, %v1373_v47 }
 0x3fd   :  { %1442 = vst.msk [vmem:[%s2639_s5 + $0x88] sm:$0xff] %vm1424_vm2, %v1365_v61 }
 0x3ff   :  { %v1691_v10 = vpop.f32.mrb[36].mxu0 }
 0x400   :  { %v1386_v2 = vadd.f32 %v1691_v10, %v2472_v18  ;;  %v1377_v27 = vpop.f32.mrb[37].mxu0 }
 0x401   :  { %v1378_v55 = vadd.f32 %v1377_v27, %v2472_v18  ;;  %v1692_v60 = vpop.f32.mrb[38].mxu0 }
 0x402   :  { %1447 = vst.msk [vmem:[%s2639_s5 + $0xb0] sm:$0xff] %vm1424_vm2, %v1386_v2  ;;  %v1389_v59 = vadd.f32 %v1692_v60, %v2472_v18  ;;  %v1380_v51 = vpop.f32.mrb[39].mxu0 }
 0x403   :  { %1445 = vst.msk [vmem:[%s2639_s5 + $0xa0] sm:$0xff] %vm1424_vm2, %v1378_v55  ;;  %v1381_v54 = vadd.f32 %v1380_v51, %v2472_v18 }
 0x404   :  { %1448 = vst.msk [vmem:[%s2639_s5 + $0xb8] sm:$0xff] %vm1424_vm2, %v1389_v59 }
 0x405   :  { %1446 = vst.msk [vmem:[%s2639_s5 + $0xa8] sm:$0xff] %vm1424_vm2, %v1381_v54 }
 0x407   :  { %v1695_v37 = vpop.f32.mrb[40].mxu0 }
 0x408   :  { %v1402_v0 = vadd.f32 %v1695_v37, %v2472_v18  ;;  %v1393_v36 = vpop.f32.mrb[41].mxu0 }
 0x409   :  { %v1394_v28 = vadd.f32 %v1393_v36, %v2472_v18  ;;  %v1696_v46 = vpop.f32.mrb[42].mxu0 }
 0x40a   :  { %1451 = vst.msk [vmem:[%s2639_s5 + $0xd0] sm:$0xff] %vm1424_vm2, %v1402_v0  ;;  %v1405_v14 = vadd.f32 %v1696_v46, %v2472_v18  ;;  %v1396_v4 = vpop.f32.mrb[43].mxu0 }
 0x40b   :  { %1449 = vst.msk [vmem:[%s2639_s5 + $0xc0] sm:$0xff] %vm1424_vm2, %v1394_v28  ;;  %v1397_v3 = vadd.f32 %v1396_v4, %v2472_v18 }
 0x40c   :  { %1452 = vst.msk [vmem:[%s2639_s5 + $0xd8] sm:$0xff] %vm1424_vm2, %v1405_v14 }
 0x40d   :  { %1450 = vst.msk [vmem:[%s2639_s5 + $0xc8] sm:$0xff] %vm1424_vm2, %v1397_v3 }
 0x40f   :  { %v1699_v53 = vpop.f32.mrb[44].mxu0 }
 0x410   :  { %v1418_v8 = vadd.f32 %v1699_v53, %v2472_v18  ;;  %v1409_v17 = vpop.f32.mrb[45].mxu0 }
 0x411   :  { %v1410_v21 = vadd.f32 %v1409_v17, %v2472_v18  ;;  %v1700_v11 = vpop.f32.mrb[46].mxu0 }
 0x412   :  { %1455 = vst.msk [vmem:[%s2639_s5 + $0xf0] sm:$0xff] %vm1424_vm2, %v1418_v8  ;;  %v1421_v13 = vadd.f32 %v1700_v11, %v2472_v18  ;;  %v1412_v6 = vpop.f32.mrb[47].mxu0 }
 0x413   :  { %1453 = vst.msk [vmem:[%s2639_s5 + $0xe0] sm:$0xff] %vm1424_vm2, %v1410_v21  ;;  %v1413_v9 = vadd.f32 %v1412_v6, %v2472_v18 }
 0x414   :  { %1456 = vst.msk [vmem:[%s2639_s5 + $0xf8] sm:$0xff] %vm1424_vm2, %v1421_v13 }
 0x415   :  { %1454 = vst.msk [vmem:[%s2639_s5 + $0xe8] sm:$0xff] %vm1424_vm2, %v1413_v9 }

</bundles_post_ra>
